<compile_context>
chip_gen: v7x
topology: tpu7x:2x2x1
jax: 0.10.0
libtpu: 0.0.40
codegen_flags: <defaults>
</compile_context>

<pallas_src>
import functools

import jax
import jax.numpy as jnp
from jax.experimental import pallas as pl
from jax.experimental.pallas import tpu as pltpu

_BN_EPS = 1e-5
_MAX_BLOCK_BYTES = 2 * 1024 * 1024   # keep streamed blocks small enough for v7x VMEM


# ---------------------------------------------------------------------------
# Tile-size helpers (always return exact divisors so accumulators stay exact).
# ---------------------------------------------------------------------------
def _pick_row_tile(m, row_bytes):
    for t in (1024, 512, 256, 128, 64, 32, 16, 8):
        if t <= m and m % t == 0 and t * row_bytes <= _MAX_BLOCK_BYTES:
            return t
    return m


def _pick_k_tile(k):
    if k <= 512:
        return k
    for t in (512, 256, 128):
        if k % t == 0:
            return t
    return k


def _pick_lane_tile(n_lanes):
    for t in (1024, 512, 256, 128):
        if t <= n_lanes and n_lanes % t == 0:
            return t
    return n_lanes


def _pick_interp_tiles(p, k, l):
    tl = l
    for t in (2048, 1024, 512, 256, 128):
        if t <= l and l % t == 0:
            tl = t
            break
    tp = p
    for t in (1024, 512, 256, 128, 64, 32, 16, 8):
        if t <= p and p % t == 0 and t * tl * 4 <= _MAX_BLOCK_BYTES:
            tp = t
            break
    return tp, tl


# ---------------------------------------------------------------------------
# Kernels
# ---------------------------------------------------------------------------
def _matmul_stats_kernel(x_ref, w_ref, y_ref, s_ref, ss_ref, acc_ref):
    """Tiled y = x @ w over (row tiles, K tiles); also accumulates per-column
    sum / sum-of-squares of y (BatchNorm batch statistics) across row tiles.
    Output tile is stored only on the last K step (saves vst per K iteration)."""
    i = pl.program_id(0)
    k = pl.program_id(1)
    nk = pl.num_programs(1)

    @pl.when((i == 0) & (k == 0))
    def _():
        s_ref[...] = jnp.zeros_like(s_ref)
        ss_ref[...] = jnp.zeros_like(ss_ref)

    @pl.when(k == 0)
    def _():
        acc_ref[...] = jnp.zeros_like(acc_ref)

    acc_ref[...] += jnp.dot(x_ref[...], w_ref[...],
                            preferred_element_type=jnp.float32)

    @pl.when(k == nk - 1)
    def _():
        y = acc_ref[...]
        y_ref[...] = y.astype(y_ref.dtype)
        s_ref[...] += jnp.sum(y, axis=0, keepdims=True)
        ss_ref[...] += jnp.sum(y * y, axis=0, keepdims=True)


def _aspp_project_kernel(x0_ref, x1_ref, x2_ref, x3_ref, x4_ref,
                         w0_ref, w1_ref, w2_ref, w3_ref, w4_ref,
                         y_ref, s_ref, ss_ref):
    """Fused ASPP projection: y = concat(x0..x4) @ W expressed as the sum of five
    per-branch MXU dots (the 1280-wide concat is never materialized in HBM), plus
    the per-column BatchNorm batch statistics of y accumulated across row tiles."""
    @pl.when(pl.program_id(0) == 0)
    def _():
        s_ref[...] = jnp.zeros_like(s_ref)
        ss_ref[...] = jnp.zeros_like(ss_ref)

    y = jnp.dot(x0_ref[...], w0_ref[...], preferred_element_type=jnp.float32)
    y += jnp.dot(x1_ref[...], w1_ref[...], preferred_element_type=jnp.float32)
    y += jnp.dot(x2_ref[...], w2_ref[...], preferred_element_type=jnp.float32)
    y += jnp.dot(x3_ref[...], w3_ref[...], preferred_element_type=jnp.float32)
    y += jnp.dot(x4_ref[...], w4_ref[...], preferred_element_type=jnp.float32)

    y_ref[...] = y
    s_ref[...] += jnp.sum(y, axis=0, keepdims=True)
    ss_ref[...] += jnp.sum(y * y, axis=0, keepdims=True)


def _bn_relu_kernel(y_ref, s_ref, ss_ref, g_ref, b_ref, o_ref, *,
                    inv_count, apply_bn, eps):
    y = y_ref[...].astype(jnp.float32)
    if apply_bn:                      # static (trace-time) switch
        mean = s_ref[...] * inv_count
        var = ss_ref[...] * inv_count - mean * mean
        y = (y - mean) * jax.lax.rsqrt(var + eps) * g_ref[...] + b_ref[...]
    o_ref[...] = jnp.maximum(y, 0.0).astype(o_ref.dtype)


def _row_mean_kernel(x_ref, o_ref, acc_ref, *, inv_n):
    j = pl.program_id(1)

    @pl.when(j == 0)
    def _():
        acc_ref[...] = jnp.zeros_like(acc_ref)

    # per-tile f32 accumulation (no full-array f32 upcast copy)
    acc_ref[...] += jnp.sum(x_ref[...].astype(jnp.float32), axis=1,
                            keepdims=True)

    @pl.when(j == pl.num_programs(1) - 1)
    def _():
        o_ref[...] = (acc_ref[...] * inv_n).astype(o_ref.dtype)


def _broadcast_rows_kernel(y_ref, o_ref):
    n = pl.program_id(0)
    row = y_ref[pl.ds(n, 1), :].astype(o_ref.dtype)   # cast BEFORE broadcasting
    o_ref[...] = jnp.broadcast_to(row, o_ref.shape)


def _interp_kernel(m_ref, x_ref, o_ref):
    """out[b, p_tile, l_tile] = M[p_tile, :] @ x[b, :, l_tile] — one 1-D bilinear
    interpolation step with channels kept on the lane axis (unmasked stores)."""
    o_ref[0] = jnp.dot(m_ref[...], x_ref[0],
                       preferred_element_type=jnp.float32).astype(o_ref.dtype)


# ---------------------------------------------------------------------------
# pallas_call wrappers
# ---------------------------------------------------------------------------
def pallas_matmul(x, w):
    m, k = x.shape
    k2, n_out = w.shape
    assert k == k2
    tk = _pick_k_tile(k)
    tm = _pick_row_tile(m, tk * x.dtype.itemsize)
    grid = (m // tm, k // tk)
    return pl.pallas_call(
        _matmul_stats_kernel,
        out_shape=(
            jax.ShapeDtypeStruct((m, n_out), jnp.float32),
            jax.ShapeDtypeStruct((1, n_out), jnp.float32),
            jax.ShapeDtypeStruct((1, n_out), jnp.float32),
        ),
        grid_spec=pltpu.PrefetchScalarGridSpec(
            num_scalar_prefetch=0,
            grid=grid,
            in_specs=[
                pl.BlockSpec((tm, tk), lambda i, kk: (i, kk)),
                pl.BlockSpec((tk, n_out), lambda i, kk: (kk, 0)),
            ],
            out_specs=[
                pl.BlockSpec((tm, n_out), lambda i, kk: (i, 0)),
                pl.BlockSpec((1, n_out), lambda i, kk: (0, 0)),
                pl.BlockSpec((1, n_out), lambda i, kk: (0, 0)),
            ],
            scratch_shapes=[pltpu.VMEM((tm, n_out), jnp.float32)],
        ),
        # The BN-stat outputs accumulate across the row axis -> keep it arbitrary.
        compiler_params=pltpu.CompilerParams(
            dimension_semantics=("arbitrary", "arbitrary")),
        cost_estimate=pl.CostEstimate(
            flops=2 * m * k * n_out,
            transcendentals=0,
            bytes_accessed=4 * (m * k + k * n_out + m * n_out + 2 * n_out)),
    )(x, w)


def pallas_aspp_project(branches, w_chunks):
    """Fused concat(branches) @ W with BatchNorm batch statistics."""
    assert len(branches) == 5 and len(w_chunks) == 5
    m, c = branches[0].shape
    n_out = w_chunks[0].shape[1]
    tm = _pick_row_tile(m, (len(branches) + 1) * c * 4)
    in_specs = ([pl.BlockSpec((tm, c), lambda i: (i, 0)) for _ in branches] +
                [pl.BlockSpec((c, n_out), lambda i: (0, 0)) for _ in w_chunks])
    return pl.pallas_call(
        _aspp_project_kernel,
        out_shape=(
            jax.ShapeDtypeStruct((m, n_out), jnp.float32),
            jax.ShapeDtypeStruct((1, n_out), jnp.float32),
            jax.ShapeDtypeStruct((1, n_out), jnp.float32),
        ),
        grid_spec=pltpu.PrefetchScalarGridSpec(
            num_scalar_prefetch=0,
            grid=(m // tm,),
            in_specs=in_specs,
            out_specs=[
                pl.BlockSpec((tm, n_out), lambda i: (i, 0)),
                pl.BlockSpec((1, n_out), lambda i: (0, 0)),
                pl.BlockSpec((1, n_out), lambda i: (0, 0)),
            ],
        ),
        compiler_params=pltpu.CompilerParams(
            dimension_semantics=("arbitrary",)),
        cost_estimate=pl.CostEstimate(
            flops=2 * m * 5 * c * n_out,
            transcendentals=0,
            bytes_accessed=4 * (5 * m * c + 5 * c * n_out + m * n_out + 2 * n_out)),
    )(*branches, *w_chunks)


def pallas_bn_relu(y, s, ss, gamma, beta, *, count, apply_bn):
    m, c = y.shape
    tm = _pick_row_tile(m, c * 4)
    kernel = functools.partial(_bn_relu_kernel, inv_count=1.0 / float(count),
                               apply_bn=apply_bn, eps=_BN_EPS)
    return pl.pallas_call(
        kernel,
        out_shape=jax.ShapeDtypeStruct((m, c), jnp.float32),
        grid_spec=pltpu.PrefetchScalarGridSpec(
            num_scalar_prefetch=0,
            grid=(m // tm,),
            in_specs=[
                pl.BlockSpec((tm, c), lambda i: (i, 0)),
                pl.BlockSpec((1, c), lambda i: (0, 0)),
                pl.BlockSpec((1, c), lambda i: (0, 0)),
                pl.BlockSpec((1, c), lambda i: (0, 0)),
                pl.BlockSpec((1, c), lambda i: (0, 0)),
            ],
            out_specs=pl.BlockSpec((tm, c), lambda i: (i, 0)),
        ),
        compiler_params=pltpu.CompilerParams(dimension_semantics=("parallel",)),
        cost_estimate=pl.CostEstimate(
            flops=8 * m * c, transcendentals=c,
            bytes_accessed=4 * (2 * m * c + 4 * c)),
    )(y, s, ss, gamma, beta)


def pallas_row_mean(x2d):
    m, n = x2d.shape
    tn = _pick_lane_tile(n)
    tm = _pick_row_tile(m, tn * x2d.dtype.itemsize)
    kernel = functools.partial(_row_mean_kernel, inv_n=1.0 / float(n))
    return pl.pallas_call(
        kernel,
        out_shape=jax.ShapeDtypeStruct((m, 1), jnp.float32),
        grid_spec=pltpu.PrefetchScalarGridSpec(
            num_scalar_prefetch=0,
            grid=(m // tm, n // tn),
            in_specs=[pl.BlockSpec((tm, tn), lambda i, j: (i, j))],
            out_specs=pl.BlockSpec((tm, 1), lambda i, j: (i, 0)),
            scratch_shapes=[pltpu.VMEM((tm, 1), jnp.float32)],
        ),
        compiler_params=pltpu.CompilerParams(
            dimension_semantics=("parallel", "arbitrary")),
        cost_estimate=pl.CostEstimate(
            flops=m * n, transcendentals=0,
            bytes_accessed=x2d.dtype.itemsize * m * n + 4 * m),
    )(x2d)


def pallas_broadcast_rows(y, hw):
    """out[b*hw + p, c] = y[b, c] — bilinear upsample of a 1x1 map == broadcast."""
    b, c = y.shape
    tr = _pick_row_tile(hw, c * 4)
    r_tiles = hw // tr
    return pl.pallas_call(
        _broadcast_rows_kernel,
        out_shape=jax.ShapeDtypeStruct((b * hw, c), jnp.float32),
        grid_spec=pltpu.PrefetchScalarGridSpec(
            num_scalar_prefetch=0,
            grid=(b, r_tiles),
            in_specs=[pl.BlockSpec((b, c), lambda n, r: (0, 0))],
            out_specs=pl.BlockSpec((tr, c), lambda n, r: (n * r_tiles + r, 0)),
        ),
        compiler_params=pltpu.CompilerParams(
            dimension_semantics=("parallel", "parallel")),
        cost_estimate=pl.CostEstimate(
            flops=0, transcendentals=0,
            bytes_accessed=4 * (b * c + b * hw * c)),
    )(y)


def pallas_interp(m, x):
    """Batched interpolation: out[b] = m @ x[b], m:(P,K), x:(B,K,L) -> (B,P,L).
    Channels stay folded into the lane axis L -> unmasked, lane-dense stores."""
    b, k, l = x.shape
    p, k2 = m.shape
    assert k == k2
    tp, tl = _pick_interp_tiles(p, k, l)
    return pl.pallas_call(
        _interp_kernel,
        out_shape=jax.ShapeDtypeStruct((b, p, l), jnp.float32),
        grid_spec=pltpu.PrefetchScalarGridSpec(
            num_scalar_prefetch=0,
            grid=(b, p // tp, l // tl),
            in_specs=[
                pl.BlockSpec((tp, k), lambda n, i, j: (i, 0)),
                pl.BlockSpec((1, k, tl), lambda n, i, j: (n, 0, j)),
            ],
            out_specs=pl.BlockSpec((1, tp, tl), lambda n, i, j: (n, i, j)),
        ),
        compiler_params=pltpu.CompilerParams(
            dimension_semantics=("parallel", "parallel", "parallel")),
        cost_estimate=pl.CostEstimate(
            flops=2 * b * p * k * l, transcendentals=0,
            bytes_accessed=4 * (p * k + b * k * l + b * p * l)),
    )(m, x)


# ---------------------------------------------------------------------------
# Layout plumbing + module building blocks
# ---------------------------------------------------------------------------
def _to_rows(x_nchw):
    n, c, h, w = x_nchw.shape
    return x_nchw.transpose(0, 2, 3, 1).reshape(n * h * w, c)


def _from_rows(rows, n, h, w):
    return rows.reshape(n, h, w, -1).transpose(0, 3, 1, 2)


def _im2col_3x3(x_nhwc, dilation):
    # TODO(synk): fuse this gather into the matmul kernel via shifted-window
    # manual DMA from a padded HBM ref instead of materialising 9x patches in HBM
    # (this is the dominant avoidable HBM traffic at production shapes).
    n, h, w, c = x_nhwc.shape
    d = dilation
    xp = jnp.pad(x_nhwc, ((0, 0), (d, d), (d, d), (0, 0)))
    taps = [xp[:, ky * d:ky * d + h, kx * d:kx * d + w, :]
            for ky in range(3) for kx in range(3)]
    return jnp.concatenate(taps, axis=-1).reshape(n * h * w, 9 * c)


def _conv1x1_bn_relu_rows(rows, w_oc_ic, gamma, beta):
    # weight pre-transposed in the wrapper -> no XLU transpose inside the kernel
    y, s, ss = pallas_matmul(rows, jnp.transpose(w_oc_ic))
    return pallas_bn_relu(y, s, ss, gamma, beta,
                          count=rows.shape[0], apply_bn=True)


def _conv3x3_bn_relu_rows(x_nhwc, w_oihw, gamma, beta, dilation):
    n, h, w, c = x_nhwc.shape
    patches = _im2col_3x3(x_nhwc, dilation)                   # (N*H*W, 9*C)
    wmat = w_oihw.transpose(2, 3, 1, 0).reshape(9 * c, -1)    # (9*C, C_out)
    y, s, ss = pallas_matmul(patches, wmat)
    return pallas_bn_relu(y, s, ss, gamma, beta,
                          count=patches.shape[0], apply_bn=True)


def _aspp_pooling_rows(x_nchw, w_oc_ic, gamma, beta):
    """AdaptiveAvgPool2d(1) -> 1x1 conv -> BN (batch stats, only if N>1) ->
    ReLU -> bilinear upsample back to (H, W)."""
    n, c_in, h, w = x_nchw.shape
    hw = h * w
    pooled = pallas_row_mean(x_nchw.reshape(n * c_in, hw)).reshape(n, c_in)
    y, s, ss = pallas_matmul(pooled, jnp.transpose(w_oc_ic))
    y = pallas_bn_relu(y, s, ss, gamma, beta, count=n, apply_bn=n > 1)
    return pallas_broadcast_rows(y, hw)                       # (N*H*W, C_out)


def _interp_matrix(out_size, in_size):
    """Row-stochastic matrix M so that M @ v == bilinear/linear interpolation
    along one axis with align_corners=False (PyTorch semantics)."""
    if in_size == 1:
        return jnp.ones((out_size, 1), jnp.float32)
    scale = in_size / out_size
    src = (jnp.arange(out_size, dtype=jnp.float32) + 0.5) * scale - 0.5
    i0 = jnp.floor(src)
    frac = src - i0
    lo = jnp.clip(i0, 0, in_size - 1).astype(jnp.int32)
    hi = jnp.clip(i0 + 1, 0, in_size - 1).astype(jnp.int32)
    rows = jnp.arange(out_size)
    m = jnp.zeros((out_size, in_size), jnp.float32)
    m = m.at[rows, lo].add(1.0 - frac)
    m = m.at[rows, hi].add(frac)
    return m


def _bilinear_upsample_rows(rows, n, h_in, w_in, h_out, w_out):
    """Exact bilinear resize (align_corners=False) of a rows-layout activation,
    done as two lane-dense batched interp matmuls (channels stay on lanes)."""
    c = rows.shape[1]
    aw = _interp_matrix(w_out, w_in)                           # (w_out, w_in)
    ah = _interp_matrix(h_out, h_in)                           # (h_out, h_in)
    t = pallas_interp(aw, rows.reshape(n * h_in, w_in, c))     # (n*h_in, w_out, c)
    t = pallas_interp(ah, t.reshape(n, h_in, w_out * c))       # (n, h_out, w_out*c)
    return t.reshape(n, h_out, w_out, c)                       # NHWC


def deeplab_head_v3plus(features, params):
    """Forward pass of DeepLabHeadV3Plus (training-mode BatchNorm statistics,
    dropout as identity), built from Pallas TPU kernels."""
    feat_low, feat_high = features
    n, _, h0, w0 = feat_low.shape
    _, _, h1, w1 = feat_high.shape

    # --- self.project: 1x1 conv -> BN -> ReLU on the low-level features -----
    low_rows = _conv1x1_bn_relu_rows(_to_rows(feat_low), params["proj_w"],
                                     params["proj_g"], params["proj_b"])

    # --- ASPP on the high-level features -------------------------------------
    x_rows = _to_rows(feat_high)
    x_nhwc = feat_high.transpose(0, 2, 3, 1)
    branches = [_conv1x1_bn_relu_rows(x_rows, params["aspp0_w"],
                                      params["aspp0_g"], params["aspp0_b"])]
    for idx, d in enumerate(params["dilations"], start=1):
        branches.append(_conv3x3_bn_relu_rows(
            x_nhwc, params[f"aspp{idx}_w"], params[f"aspp{idx}_g"],
            params[f"aspp{idx}_b"], d))
    branches.append(_aspp_pooling_rows(feat_high, params["aspp_pool_w"],
                                       params["aspp_pool_g"],
                                       params["aspp_pool_b"]))

    # --- ASPP projection: fused concat + 1x1 conv (no 1280-wide HBM concat) --
    w_proj = params["aspp_proj_w"]                             # (256, 5*256)
    w_chunks, off = [], 0
    for br in branches:
        cw = br.shape[1]
        w_chunks.append(jnp.transpose(w_proj[:, off:off + cw]))
        off += cw
    y, s, ss = pallas_aspp_project(branches, w_chunks)
    aspp_rows = pallas_bn_relu(y, s, ss, params["aspp_proj_g"],
                               params["aspp_proj_b"],
                               count=branches[0].shape[0], apply_bn=True)
    # TODO(synk): nn.Dropout(0.1) after the ASPP projection is treated as
    # identity (inference-mode dropout).

    # --- bilinear upsample ASPP output to the low-level spatial size ---------
    up_nhwc = _bilinear_upsample_rows(aspp_rows, n, h1, w1, h0, w0)

    # --- concat + final 3x3 conv -> BN -> ReLU --------------------------------
    cat2 = jnp.concatenate(
        [low_rows.reshape(n, h0, w0, -1), up_nhwc], axis=-1)   # (N, H0, W0, 304)
    out_rows = _conv3x3_bn_relu_rows(cat2, params["head_w"], params["head_g"],
                                     params["head_b"], 1)
    return _from_rows(out_rows, n, h0, w0)                     # (N, 256, H0, W0)


# ---------------------------------------------------------------------------
# Deterministic synthetic parameters + pure-JAX reference + test
# ---------------------------------------------------------------------------
def make_params(key, c_in, c_low, dilations):
    c_out = 256
    ks = jax.random.split(key, 8)

    def w_init(k, shape):
        fan_in = 1
        for s in shape[1:]:
            fan_in *= s
        return jax.random.normal(k, shape, jnp.float32) * (2.0 / fan_in) ** 0.5

    def gb(c):
        return (jnp.linspace(0.8, 1.2, c, dtype=jnp.float32).reshape(1, c),
                jnp.linspace(-0.1, 0.1, c, dtype=jnp.float32).reshape(1, c))

    p = {"dilations": tuple(dilations)}
    p["proj_w"] = w_init(ks[0], (48, c_low));        p["proj_g"], p["proj_b"] = gb(48)
    p["aspp0_w"] = w_init(ks[1], (c_out, c_in));     p["aspp0_g"], p["aspp0_b"] = gb(c_out)
    for i, k in zip((1, 2, 3), ks[2:5]):
        p[f"aspp{i}_w"] = w_init(k, (c_out, c_in, 3, 3))
        p[f"aspp{i}_g"], p[f"aspp{i}_b"] = gb(c_out)
    p["aspp_pool_w"] = w_init(ks[5], (c_out, c_in)); p["aspp_pool_g"], p["aspp_pool_b"] = gb(c_out)
    p["aspp_proj_w"] = w_init(ks[6], (c_out, 5 * c_out)); p["aspp_proj_g"], p["aspp_proj_b"] = gb(c_out)
    p["head_w"] = w_init(ks[7], (c_out, c_out + 48, 3, 3)); p["head_g"], p["head_b"] = gb(c_out)
    return p


def reference_forward(features, params):
    """Pure-JAX reference mirroring the PyTorch forward."""
    feat_low, feat_high = features
    n, _, h0, w0 = feat_low.shape
    _, _, h1, w1 = feat_high.shape
    hp = jax.lax.Precision.HIGHEST

    def conv(x, w, dilation=1, padding=0):
        return jax.lax.conv_general_dilated(
            x, w, (1, 1), [(padding, padding)] * 2,
            rhs_dilation=(dilation, dilation),
            dimension_numbers=("NCHW", "OIHW", "NCHW"),
            precision=hp, preferred_element_type=jnp.float32)

    def bn(x, g, b):
        mean = jnp.mean(x, axis=(0, 2, 3), keepdims=True)
        var = jnp.mean((x - mean) ** 2, axis=(0, 2, 3), keepdims=True)
        xh = (x - mean) * jax.lax.rsqrt(var + _BN_EPS)
        return xh * g.reshape(1, -1, 1, 1) + b.reshape(1, -1, 1, 1)

    relu = lambda t: jnp.maximum(t, 0.0)

    low = relu(bn(conv(feat_low, params["proj_w"][:, :, None, None]),
                  params["proj_g"], params["proj_b"]))

    branches = [relu(bn(conv(feat_high, params["aspp0_w"][:, :, None, None]),
                        params["aspp0_g"], params["aspp0_b"]))]
    for idx, d in enumerate(params["dilations"], start=1):
        branches.append(
            relu(bn(conv(feat_high, params[f"aspp{idx}_w"], dilation=d, padding=d),
                    params[f"aspp{idx}_g"], params[f"aspp{idx}_b"])))

    pooled = jnp.mean(feat_high, axis=(2, 3))
    yp = jnp.einsum("nc,oc->no", pooled, params["aspp_pool_w"], precision=hp)
    if n > 1:
        mu = jnp.mean(yp, axis=0, keepdims=True)
        va = jnp.mean((yp - mu) ** 2, axis=0, keepdims=True)
        yp = ((yp - mu) * jax.lax.rsqrt(va + _BN_EPS) * params["aspp_pool_g"]
              + params["aspp_pool_b"])
    yp = relu(yp)
    branches.append(jnp.broadcast_to(yp[:, :, None, None],
                                     (n, yp.shape[1], h1, w1)))

    cat = jnp.concatenate(branches, axis=1)
    aspp = relu(bn(conv(cat, params["aspp_proj_w"][:, :, None, None]),
                   params["aspp_proj_g"], params["aspp_proj_b"]))

    up = jnp.einsum("Hh,nchw->ncHw", _interp_matrix(h0, h1), aspp, precision=hp)
    up = jnp.einsum("Ww,ncHw->ncHW", _interp_matrix(w0, w1), up, precision=hp)

    cat2 = jnp.concatenate([low, up], axis=1)
    return relu(bn(conv(cat2, params["head_w"], padding=1),
                   params["head_g"], params["head_b"]))


if __name__ == "__main__":
    N, C_LOW, H0, W0 = 2, 8, 16, 16      # low-level features
    C_IN, H1, W1 = 32, 8, 8              # high-level (ASPP input) features
    DILATIONS = (1, 2, 3)

    key = jax.random.PRNGKey(0)
    k_low, k_high, k_par = jax.random.split(key, 3)
    feat_low = jax.random.normal(k_low, (N, C_LOW, H0, W0), jnp.float32)
    feat_high = jax.random.normal(k_high, (N, C_IN, H1, W1), jnp.float32)
    params = make_params(k_par, C_IN, C_LOW, DILATIONS)

    out = jax.block_until_ready(deeplab_head_v3plus((feat_low, feat_high), params))
    ref = jax.block_until_ready(reference_forward((feat_low, feat_high), params))

    assert out.shape == (N, 256, H0, W0) and out.dtype == jnp.float32
    # Tolerance covers MXU default-precision accumulation differences across the
    # chained conv/matmul stages; real logic bugs show up as O(1) errors.
    assert jnp.allclose(out, ref, atol=1e-2, rtol=1e-2), \
        float(jnp.max(jnp.abs(out - ref)))
    print("KERNEL_OK")
</pallas_src>

<mosaic_0001>
module attributes {stable_mosaic.version = 11 : i64} {
  func.func @_matmul_stats_kernel(%arg0: i32, %arg1: i32, %arg2: memref<512x8xf32, #tpu.memory_space<vmem>>, %arg3: memref<8x48xf32, #tpu.memory_space<vmem>>, %arg4: memref<512x48xf32, #tpu.memory_space<vmem>>, %arg5: memref<1x48xf32, #tpu.memory_space<vmem>>, %arg6: memref<1x48xf32, #tpu.memory_space<vmem>>, %arg7: memref<512x48xf32, #tpu.memory_space<vmem>>) attributes {dimension_semantics = [#tpu.dimension_semantics<arbitrary>, #tpu.dimension_semantics<arbitrary>], iteration_bounds = array<i64: 1, 1>, scalar_prefetch = 0 : i64, scratch_operands = 1 : i64, tpu.core_type = #tpu.core_type<tc>, window_params = [{transform_indices = @transform_0, window_bounds = array<i64: 512, 8>}, {transform_indices = @transform_1, window_bounds = array<i64: 8, 48>}, {transform_indices = @transform_2, window_bounds = array<i64: 512, 48>}, {pipeline_mode = #tpu.pipeline_mode<synchronous>, transform_indices = @transform_3, window_bounds = array<i64: 1, 48>}, {pipeline_mode = #tpu.pipeline_mode<synchronous>, transform_indices = @transform_4, window_bounds = array<i64: 1, 48>}]} {
    %c0_i32 = arith.constant 0 : i32
    %0 = arith.cmpi eq, %arg0, %c0_i32 : i32
    %c0_i32_0 = arith.constant 0 : i32
    %1 = arith.cmpi eq, %arg1, %c0_i32_0 : i32
    %2 = arith.andi %0, %1 : i1
    %3 = arith.extui %2 : i1 to i32
    %c0_i32_1 = arith.constant 0 : i32
    %4 = arith.cmpi ne, %3, %c0_i32_1 : i32
    scf.if %4 {
      %cst_13 = arith.constant 0.000000e+00 : f32
      %17 = vector.broadcast %cst_13 : f32 to vector<1x48xf32>
      %c0_14 = arith.constant 0 : index
      %c0_15 = arith.constant 0 : index
      %18 = vector.load %arg5[%c0_14, %c0_15] : memref<1x48xf32, #tpu.memory_space<vmem>>, vector<1x48xf32>
      tpu.vector_store %arg5[%c0_14, %c0_15], %17 {strides = array<i32>} : memref<1x48xf32, #tpu.memory_space<vmem>>, vector<1x48xf32>,
      %cst_16 = arith.constant 0.000000e+00 : f32
      %19 = vector.broadcast %cst_16 : f32 to vector<1x48xf32>
      %c0_17 = arith.constant 0 : index
      %c0_18 = arith.constant 0 : index
      %20 = vector.load %arg6[%c0_17, %c0_18] : memref<1x48xf32, #tpu.memory_space<vmem>>, vector<1x48xf32>
      tpu.vector_store %arg6[%c0_17, %c0_18], %19 {strides = array<i32>} : memref<1x48xf32, #tpu.memory_space<vmem>>, vector<1x48xf32>,
    } else {
    }
    %c0_i32_2 = arith.constant 0 : i32
    %5 = arith.cmpi eq, %arg1, %c0_i32_2 : i32
    %6 = arith.extui %5 : i1 to i32
    %c0_i32_3 = arith.constant 0 : i32
    %7 = arith.cmpi ne, %6, %c0_i32_3 : i32
    scf.if %7 {
      %cst_13 = arith.constant 0.000000e+00 : f32
      %17 = vector.broadcast %cst_13 : f32 to vector<512x48xf32>
      %c0_14 = arith.constant 0 : index
      %c0_15 = arith.constant 0 : index
      %18 = vector.load %arg7[%c0_14, %c0_15] : memref<512x48xf32, #tpu.memory_space<vmem>>, vector<512x48xf32>
      tpu.vector_store %arg7[%c0_14, %c0_15], %17 {strides = array<i32>} : memref<512x48xf32, #tpu.memory_space<vmem>>, vector<512x48xf32>,
    } else {
    }
    %c0 = arith.constant 0 : index
    %c0_4 = arith.constant 0 : index
    %8 = vector.load %arg7[%c0, %c0_4] : memref<512x48xf32, #tpu.memory_space<vmem>>, vector<512x48xf32>
    %c0_5 = arith.constant 0 : index
    %c0_6 = arith.constant 0 : index
    %9 = vector.load %arg2[%c0_5, %c0_6] : memref<512x8xf32, #tpu.memory_space<vmem>>, vector<512x8xf32>
    %c0_7 = arith.constant 0 : index
    %c0_8 = arith.constant 0 : index
    %10 = vector.load %arg3[%c0_7, %c0_8] : memref<8x48xf32, #tpu.memory_space<vmem>>, vector<8x48xf32>
    %cst = arith.constant dense<0.000000e+00> : vector<512x48xf32>
    %11 = tpu.matmul %9, %10, %cst {dimension_numbers = #tpu.dot_dimension_numbers<[1], [0], [0], [1], [0, 0, 1, 1], [], []>} : vector<512x8xf32>, vector<8x48xf32>, vector<512x48xf32> -> vector<512x48xf32>
    %12 = arith.addf %8, %11 : vector<512x48xf32>
    %c0_9 = arith.constant 0 : index
    %c0_10 = arith.constant 0 : index
    %13 = vector.load %arg7[%c0_9, %c0_10] : memref<512x48xf32, #tpu.memory_space<vmem>>, vector<512x48xf32>
    tpu.vector_store %arg7[%c0_9, %c0_10], %12 {strides = array<i32>} : memref<512x48xf32, #tpu.memory_space<vmem>>, vector<512x48xf32>,
    %c0_i32_11 = arith.constant 0 : i32
    %14 = arith.cmpi eq, %arg1, %c0_i32_11 : i32
    %15 = arith.extui %14 : i1 to i32
    %c0_i32_12 = arith.constant 0 : i32
    %16 = arith.cmpi ne, %15, %c0_i32_12 : i32
    scf.if %16 {
      %c0_13 = arith.constant 0 : index
      %c0_14 = arith.constant 0 : index
      %17 = vector.load %arg7[%c0_13, %c0_14] : memref<512x48xf32, #tpu.memory_space<vmem>>, vector<512x48xf32>
      %c0_15 = arith.constant 0 : index
      %c0_16 = arith.constant 0 : index
      %18 = vector.load %arg4[%c0_15, %c0_16] : memref<512x48xf32, #tpu.memory_space<vmem>>, vector<512x48xf32>
      tpu.vector_store %arg4[%c0_15, %c0_16], %17 {strides = array<i32>} : memref<512x48xf32, #tpu.memory_space<vmem>>, vector<512x48xf32>,
      %c0_17 = arith.constant 0 : index
      %c0_18 = arith.constant 0 : index
      %19 = vector.load %arg5[%c0_17, %c0_18] : memref<1x48xf32, #tpu.memory_space<vmem>>, vector<1x48xf32>
      %cst_19 = arith.constant dense<0.000000e+00> : vector<48xf32>
      %20 = vector.multi_reduction <add>, %17, %cst_19 [0] : vector<512x48xf32> to vector<48xf32>
      %21 = vector.shape_cast %20 : vector<48xf32> to vector<1x48xf32>
      %22 = arith.addf %19, %21 : vector<1x48xf32>
      %c0_20 = arith.constant 0 : index
      %c0_21 = arith.constant 0 : index
      %23 = vector.load %arg5[%c0_20, %c0_21] : memref<1x48xf32, #tpu.memory_space<vmem>>, vector<1x48xf32>
      tpu.vector_store %arg5[%c0_20, %c0_21], %22 {strides = array<i32>} : memref<1x48xf32, #tpu.memory_space<vmem>>, vector<1x48xf32>,
      %c0_22 = arith.constant 0 : index
      %c0_23 = arith.constant 0 : index
      %24 = vector.load %arg6[%c0_22, %c0_23] : memref<1x48xf32, #tpu.memory_space<vmem>>, vector<1x48xf32>
      %25 = arith.mulf %17, %17 : vector<512x48xf32>
      %cst_24 = arith.constant dense<0.000000e+00> : vector<48xf32>
      %26 = vector.multi_reduction <add>, %25, %cst_24 [0] : vector<512x48xf32> to vector<48xf32>
      %27 = vector.shape_cast %26 : vector<48xf32> to vector<1x48xf32>
      %28 = arith.addf %24, %27 : vector<1x48xf32>
      %c0_25 = arith.constant 0 : index
      %c0_26 = arith.constant 0 : index
      %29 = vector.load %arg6[%c0_25, %c0_26] : memref<1x48xf32, #tpu.memory_space<vmem>>, vector<1x48xf32>
      tpu.vector_store %arg6[%c0_25, %c0_26], %28 {strides = array<i32>} : memref<1x48xf32, #tpu.memory_space<vmem>>, vector<1x48xf32>,
    } else {
    }
    return
  }
  func.func @transform_0(%arg0: i32, %arg1: i32) -> (i32, i32) {
    %c0_i32 = arith.constant 0 : i32
    return %arg0, %arg1 : i32, i32
  }
  func.func @transform_1(%arg0: i32, %arg1: i32) -> (i32, i32) {
    %c0_i32 = arith.constant 0 : i32
    %c0_i32_0 = arith.constant 0 : i32
    return %arg1, %c0_i32 : i32, i32
  }
  func.func @transform_2(%arg0: i32, %arg1: i32) -> (i32, i32) {
    %c0_i32 = arith.constant 0 : i32
    %c0_i32_0 = arith.constant 0 : i32
    return %arg0, %c0_i32 : i32, i32
  }
  func.func @transform_3(%arg0: i32, %arg1: i32) -> (i32, i32) {
    %c0_i32 = arith.constant 0 : i32
    %c0_i32_0 = arith.constant 0 : i32
    %c0_i32_1 = arith.constant 0 : i32
    return %c0_i32, %c0_i32_0 : i32, i32
  }
  func.func @transform_4(%arg0: i32, %arg1: i32) -> (i32, i32) {
    %c0_i32 = arith.constant 0 : i32
    %c0_i32_0 = arith.constant 0 : i32
    %c0_i32_1 = arith.constant 0 : i32
    return %c0_i32, %c0_i32_0 : i32, i32
  }
}

</mosaic_0001>

<bundles_post_ra>
// kernel: tpu_custom_call.1
= control target key start
LH: loop header
LB: loop body
LE: loop exit
PB: predicated region body
PF: predicated region fallthrough
CT: control target
= control target key end

     0   :  { %10 = vsyncpa [#allocation4], 0  ;;  %vm222_vm0 = vcmask 64512   ;;  %vm28_vm1 = vcmask 392192   ;;  %v1709_v4 = vmov 0.0   ;;  %s2898_s0 = inlined_call_operand.vmem [shape: f32[512,8], index: 0, kind: input, shape index: {}]   ;;  %s2899_s1 = inlined_call_operand.vmem [shape: f32[8,48], index: 1, kind: input, shape index: {}]   ;;  %s2900_s2 = inlined_call_operand.vmem [shape: f32[512,48], index: 2, kind: output, shape index: {0}]   ;;  %s2901_s3 = inlined_call_operand.hbm [shape: f32[1,48], index: 3, kind: output, shape index: {1}]   ;;  %s2902_s4 = inlined_call_operand.hbm [shape: f32[1,48], index: 4, kind: output, shape index: {2}]  }
   0x1   :  { %v1740_v0 = vld [vmem:[%s2899_s1] sm:$0xff]  ;;  %v1748_v2 = vld [vmem:[%s2898_s0 + $0x8] sm:$0xff]  ;;  %v1755_v3 = vld [vmem:[%s2898_s0 + $0x10] sm:$0xff]  ;;  %30 = vst.msk [vmem:[#allocation2 + $0x8] sm:$0xff] %vm28_vm1, %v1709_v4 }
   0x2   :  { %v157_v1 = vld [vmem:[%s2898_s0] sm:$0xff]  ;;  %1558 = vmatprep.subr.mxu0 %v1740_v0  ;;  %29 = vst.msk [vmem:[#allocation2] sm:$0xff] %vm28_vm1, %v1709_v4  ;;  %31 = vst.msk [vmem:[#allocation2 + $0x10] sm:$0xff] %vm28_vm1, %v1709_v4  ;;  %1656 = vmatprep.subr.mxu1 %v1740_v0  ;;  %v160_v5 = vld [vmem:[%s2898_s0 + $0x18] sm:$0xff] }
   0x3   :  { %1560 = vmatprep.mubr.msk.f32.mxu0 %vm222_vm0, %v157_v1  ;;  %32 = vst.msk [vmem:[#allocation2 + $0x18] sm:$0xff] %vm28_vm1, %v1709_v4  ;;  %33 = vst.msk [vmem:[#allocation2 + $0x20] sm:$0xff] %vm28_vm1, %v1709_v4  ;;  %1559 = vmatpush3.msra.mxu0 %v1740_v0  ;;  %v161_v6 = vld [vmem:[%s2898_s0 + $0x20] sm:$0xff]  ;;  %v162_v7 = vld [vmem:[%s2898_s0 + $0x28] sm:$0xff] }
   0x4   :  { %34 = vst.msk [vmem:[#allocation2 + $0x28] sm:$0xff] %vm28_vm1, %v1709_v4  ;;  %35 = vst.msk [vmem:[#allocation2 + $0x30] sm:$0xff] %vm28_vm1, %v1709_v4  ;;  %1561 = vmatmul.mubr.msk.f32.vlgmr.msra.gmra.mrb[0].mxu0 %vm222_vm0, %v1748_v2  ;;  %1657 = vmatpush3.msra.mxu1 %v1740_v0  ;;  %v163_v8 = vld [vmem:[%s2898_s0 + $0x30] sm:$0xff]  ;;  %v189_v9 = vld [vmem:[%s2898_s0 + $0x100] sm:$0xff] }
   0x5   :  { %36 = vst.msk [vmem:[#allocation2 + $0x38] sm:$0xff] %vm28_vm1, %v1709_v4  ;;  %37 = vst.msk [vmem:[#allocation2 + $0x40] sm:$0xff] %vm28_vm1, %v1709_v4  ;;  %1563 = vmatprep.mubr.msk.f32.mxu0 %vm222_vm0, %v1755_v3  ;;  %v190_v10 = vld [vmem:[%s2898_s0 + $0x108] sm:$0xff]  ;;  %v191_v11 = vld [vmem:[%s2898_s0 + $0x110] sm:$0xff]  ;;  %1608 = vmatprep.mubr.msk.f32.mxu1 %vm222_vm0, %v189_v9 }
   0x6   :  { %38 = vst.msk [vmem:[#allocation2 + $0x48] sm:$0xff] %vm28_vm1, %v1709_v4  ;;  %39 = vst.msk [vmem:[#allocation2 + $0x50] sm:$0xff] %vm28_vm1, %v1709_v4  ;;  %v164_v12 = vld [vmem:[%s2898_s0 + $0x38] sm:$0xff]  ;;  %v165_v13 = vld [vmem:[%s2898_s0 + $0x40] sm:$0xff]  ;;  %1609 = vmatmul.mubr.msk.f32.vlgmr.msra.gmra.mrb[0].mxu1 %vm222_vm0, %v190_v10 }
   0x7   :  { %40 = vst.msk [vmem:[#allocation2 + $0x58] sm:$0xff] %vm28_vm1, %v1709_v4  ;;  %41 = vst.msk [vmem:[#allocation2 + $0x60] sm:$0xff] %vm28_vm1, %v1709_v4  ;;  %1611 = vmatprep.mubr.msk.f32.mxu1 %vm222_vm0, %v191_v11  ;;  %v192_v14 = vld [vmem:[%s2898_s0 + $0x118] sm:$0xff]  ;;  %v193_v15 = vld [vmem:[%s2898_s0 + $0x120] sm:$0xff] }
   0x8   :  { %42 = vst.msk [vmem:[#allocation2 + $0x68] sm:$0xff] %vm28_vm1, %v1709_v4  ;;  %43 = vst.msk [vmem:[#allocation2 + $0x70] sm:$0xff] %vm28_vm1, %v1709_v4  ;;  %1564 = vmatmul.mubr.msk.f32.gmra.mrb[2].mxu0 %vm222_vm0, %v160_v5  ;;  %v166_v16 = vld [vmem:[%s2898_s0 + $0x48] sm:$0xff]  ;;  %v167_v17 = vld [vmem:[%s2898_s0 + $0x50] sm:$0xff] }
   0x9   :  { %44 = vst.msk [vmem:[#allocation2 + $0x78] sm:$0xff] %vm28_vm1, %v1709_v4  ;;  %45 = vst.msk [vmem:[#allocation2 + $0x80] sm:$0xff] %vm28_vm1, %v1709_v4  ;;  %1566 = vmatprep.mubr.msk.f32.mxu0 %vm222_vm0, %v161_v6  ;;  %v194_v18 = vld [vmem:[%s2898_s0 + $0x128] sm:$0xff]  ;;  %v195_v19 = vld [vmem:[%s2898_s0 + $0x130] sm:$0xff] }
   0xa   :  { %46 = vst.msk [vmem:[#allocation2 + $0x88] sm:$0xff] %vm28_vm1, %v1709_v4  ;;  %47 = vst.msk [vmem:[#allocation2 + $0x90] sm:$0xff] %vm28_vm1, %v1709_v4  ;;  %1612 = vmatmul.mubr.msk.f32.gmra.mrb[2].mxu1 %vm222_vm0, %v192_v14  ;;  %v168_v20 = vld [vmem:[%s2898_s0 + $0x58] sm:$0xff]  ;;  %v169_v21 = vld [vmem:[%s2898_s0 + $0x60] sm:$0xff] }
   0xb   :  { %48 = vst.msk [vmem:[#allocation2 + $0x98] sm:$0xff] %vm28_vm1, %v1709_v4  ;;  %49 = vst.msk [vmem:[#allocation2 + $0xa0] sm:$0xff] %vm28_vm1, %v1709_v4  ;;  %1614 = vmatprep.mubr.msk.f32.mxu1 %vm222_vm0, %v193_v15  ;;  %v196_v22 = vld [vmem:[%s2898_s0 + $0x138] sm:$0xff] }
   0xc   :  { %50 = vst.msk [vmem:[#allocation2 + $0xa8] sm:$0xff] %vm28_vm1, %v1709_v4  ;;  %51 = vst.msk [vmem:[#allocation2 + $0xb0] sm:$0xff] %vm28_vm1, %v1709_v4  ;;  %1567 = vmatmul.mubr.msk.f32.gmra.mrb[4].mxu0 %vm222_vm0, %v162_v7 }
   0xd   :  { %52 = vst.msk [vmem:[#allocation2 + $0xb8] sm:$0xff] %vm28_vm1, %v1709_v4  ;;  %53 = vst.msk [vmem:[#allocation2 + $0xc0] sm:$0xff] %vm28_vm1, %v1709_v4  ;;  %1569 = vmatprep.mubr.msk.f32.mxu0 %vm222_vm0, %v163_v8 }
   0xe   :  { %54 = vst.msk [vmem:[#allocation2 + $0xc8] sm:$0xff] %vm28_vm1, %v1709_v4  ;;  %55 = vst.msk [vmem:[#allocation2 + $0xd0] sm:$0xff] %vm28_vm1, %v1709_v4  ;;  %1615 = vmatmul.mubr.msk.f32.gmra.mrb[4].mxu1 %vm222_vm0, %v194_v18 }
   0xf   :  { %56 = vst.msk [vmem:[#allocation2 + $0xd8] sm:$0xff] %vm28_vm1, %v1709_v4  ;;  %57 = vst.msk [vmem:[#allocation2 + $0xe0] sm:$0xff] %vm28_vm1, %v1709_v4  ;;  %1617 = vmatprep.mubr.msk.f32.mxu1 %vm222_vm0, %v195_v19 }
  0x10   :  { %58 = vst.msk [vmem:[#allocation2 + $0xe8] sm:$0xff] %vm28_vm1, %v1709_v4  ;;  %59 = vst.msk [vmem:[#allocation2 + $0xf0] sm:$0xff] %vm28_vm1, %v1709_v4  ;;  %1570 = vmatmul.mubr.msk.f32.gmra.mrb[6].mxu0 %vm222_vm0, %v164_v12 }
  0x11   :  { %60 = vst.msk [vmem:[#allocation2 + $0xf8] sm:$0xff] %vm28_vm1, %v1709_v4  ;;  %61 = vst.msk [vmem:[#allocation2 + $0x100] sm:$0xff] %vm28_vm1, %v1709_v4  ;;  %1572 = vmatprep.mubr.msk.f32.mxu0 %vm222_vm0, %v165_v13 }
  0x12   :  { %62 = vst.msk [vmem:[#allocation2 + $0x108] sm:$0xff] %vm28_vm1, %v1709_v4  ;;  %63 = vst.msk [vmem:[#allocation2 + $0x110] sm:$0xff] %vm28_vm1, %v1709_v4 }
  0x13   :  { %64 = vst.msk [vmem:[#allocation2 + $0x118] sm:$0xff] %vm28_vm1, %v1709_v4  ;;  %65 = vst.msk [vmem:[#allocation2 + $0x120] sm:$0xff] %vm28_vm1, %v1709_v4 }
  0x14   :  { %66 = vst.msk [vmem:[#allocation2 + $0x128] sm:$0xff] %vm28_vm1, %v1709_v4  ;;  %67 = vst.msk [vmem:[#allocation2 + $0x130] sm:$0xff] %vm28_vm1, %v1709_v4  ;;  %1573 = vmatmul.mubr.msk.f32.gmra.mrb[8].mxu0 %vm222_vm0, %v166_v16 }
  0x15   :  { %68 = vst.msk [vmem:[#allocation2 + $0x138] sm:$0xff] %vm28_vm1, %v1709_v4  ;;  %69 = vst.msk [vmem:[#allocation2 + $0x140] sm:$0xff] %vm28_vm1, %v1709_v4  ;;  %1575 = vmatprep.mubr.msk.f32.mxu0 %vm222_vm0, %v167_v17 }
  0x16   :  { %70 = vst.msk [vmem:[#allocation2 + $0x148] sm:$0xff] %vm28_vm1, %v1709_v4  ;;  %71 = vst.msk [vmem:[#allocation2 + $0x150] sm:$0xff] %vm28_vm1, %v1709_v4 }
  0x17   :  { %72 = vst.msk [vmem:[#allocation2 + $0x158] sm:$0xff] %vm28_vm1, %v1709_v4  ;;  %73 = vst.msk [vmem:[#allocation2 + $0x160] sm:$0xff] %vm28_vm1, %v1709_v4 }
  0x18   :  { %74 = vst.msk [vmem:[#allocation2 + $0x168] sm:$0xff] %vm28_vm1, %v1709_v4  ;;  %75 = vst.msk [vmem:[#allocation2 + $0x170] sm:$0xff] %vm28_vm1, %v1709_v4 }
  0x19   :  { %76 = vst.msk [vmem:[#allocation2 + $0x178] sm:$0xff] %vm28_vm1, %v1709_v4  ;;  %77 = vst.msk [vmem:[#allocation2 + $0x180] sm:$0xff] %vm28_vm1, %v1709_v4 }
  0x1a   :  { %78 = vst.msk [vmem:[#allocation2 + $0x188] sm:$0xff] %vm28_vm1, %v1709_v4  ;;  %79 = vst.msk [vmem:[#allocation2 + $0x190] sm:$0xff] %vm28_vm1, %v1709_v4 }
  0x1b   :  { %80 = vst.msk [vmem:[#allocation2 + $0x198] sm:$0xff] %vm28_vm1, %v1709_v4  ;;  %81 = vst.msk [vmem:[#allocation2 + $0x1a0] sm:$0xff] %vm28_vm1, %v1709_v4 }
  0x1c   :  { %82 = vst.msk [vmem:[#allocation2 + $0x1a8] sm:$0xff] %vm28_vm1, %v1709_v4  ;;  %83 = vst.msk [vmem:[#allocation2 + $0x1b0] sm:$0xff] %vm28_vm1, %v1709_v4 }
  0x1d   :  { %84 = vst.msk [vmem:[#allocation2 + $0x1b8] sm:$0xff] %vm28_vm1, %v1709_v4  ;;  %85 = vst.msk [vmem:[#allocation2 + $0x1c0] sm:$0xff] %vm28_vm1, %v1709_v4 }
  0x1e   :  { %86 = vst.msk [vmem:[#allocation2 + $0x1c8] sm:$0xff] %vm28_vm1, %v1709_v4  ;;  %87 = vst.msk [vmem:[#allocation2 + $0x1d0] sm:$0xff] %vm28_vm1, %v1709_v4 }
  0x1f   :  { %88 = vst.msk [vmem:[#allocation2 + $0x1d8] sm:$0xff] %vm28_vm1, %v1709_v4  ;;  %89 = vst.msk [vmem:[#allocation2 + $0x1e0] sm:$0xff] %vm28_vm1, %v1709_v4 }
  0x20   :  { %90 = vst.msk [vmem:[#allocation2 + $0x1e8] sm:$0xff] %vm28_vm1, %v1709_v4  ;;  %91 = vst.msk [vmem:[#allocation2 + $0x1f0] sm:$0xff] %vm28_vm1, %v1709_v4 }
  0x21   :  { %92 = vst.msk [vmem:[#allocation2 + $0x1f8] sm:$0xff] %vm28_vm1, %v1709_v4 }
  0x22   :  { %11 = vsyncpa [#allocation6], 0  ;;  %1576 = vmatmul.mubr.msk.f32.gmra.mrb[10].mxu0 %vm222_vm0, %v168_v20  ;;  %v197_v23 = vld [vmem:[%s2898_s0 + $0x140] sm:$0xff]  ;;  %v170_v24 = vld [vmem:[%s2898_s0 + $0x68] sm:$0xff]  ;;  %1618 = vmatmul.mubr.msk.f32.gmra.mrb[6].mxu1 %vm222_vm0, %v196_v22  ;;  %vm22_vm2 = vcmask 385024   ;;  %s1711_s25 = smov [#allocation5]  }
  0x23   :  { %1578 = vmatprep.mubr.msk.f32.mxu0 %vm222_vm0, %v169_v21  ;;  %v171_v25 = vld [vmem:[%s2898_s0 + $0x70] sm:$0xff]  ;;  %1620 = vmatprep.mubr.msk.f32.mxu1 %vm222_vm0, %v197_v23  ;;  %v198_v26 = vld [vmem:[%s2898_s0 + $0x148] sm:$0xff]  ;;  %v172_v28 = vld [vmem:[%s2898_s0 + $0x78] sm:$0xff]  ;;  %23 = vst.msk [vmem:[#allocation3] sm:$0x1] %vm22_vm2, %v1709_v4  ;;  %s1415_s26 = sshll.u32 %s1711_s25, 4  ;;  %s2865_s26 = int_to_ptr.vmem [resolvable:$true] %s1415_s26 }
  0x24   :  { %v199_v27 = vld [vmem:[%s2898_s0 + $0x150] sm:$0xff]  ;;  %v173_v29 = vld [vmem:[%s2898_s0 + $0x80] sm:$0xff]  ;;  %v200_v30 = vld [vmem:[%s2898_s0 + $0x158] sm:$0xff]  ;;  %24 = vst.msk [vmem:[#allocation5] sm:$0x1] %vm22_vm2, %v1709_v4 }
  0x25   :  { %v201_v31 = vld [vmem:[%s2898_s0 + $0x160] sm:$0xff]  ;;  %v174_v32 = vld [vmem:[%s2898_s0 + $0x88] sm:$0xff]  ;;  %v175_v33 = vld [vmem:[%s2898_s0 + $0x90] sm:$0xff] }
  0x26   :  { %1579 = vmatmul.mubr.msk.f32.gmra.mrb[12].mxu0 %vm222_vm0, %v170_v24  ;;  %1621 = vmatmul.mubr.msk.f32.gmra.mrb[8].mxu1 %vm222_vm0, %v198_v26  ;;  %v202_v34 = vld [vmem:[%s2898_s0 + $0x168] sm:$0xff]  ;;  %v203_v35 = vld [vmem:[%s2898_s0 + $0x170] sm:$0xff]  ;;  %v176_v36 = vld [vmem:[%s2898_s0 + $0x98] sm:$0xff] }
  0x27   :  { %1581 = vmatprep.mubr.msk.f32.mxu0 %vm222_vm0, %v171_v25  ;;  %1623 = vmatprep.mubr.msk.f32.mxu1 %vm222_vm0, %v199_v27  ;;  %v177_v37 = vld [vmem:[%s2898_s0 + $0xa0] sm:$0xff]  ;;  %v204_v38 = vld [vmem:[%s2898_s0 + $0x178] sm:$0xff]  ;;  %v178_v40 = vld [vmem:[%s2898_s0 + $0xa8] sm:$0xff] }
  0x28   :  { %v205_v39 = vld [vmem:[%s2898_s0 + $0x180] sm:$0xff]  ;;  %v179_v41 = vld [vmem:[%s2898_s0 + $0xb0] sm:$0xff]  ;;  %v206_v42 = vld [vmem:[%s2898_s0 + $0x188] sm:$0xff] }
  0x29   :  { %v207_v43 = vld [vmem:[%s2898_s0 + $0x190] sm:$0xff]  ;;  %v180_v44 = vld [vmem:[%s2898_s0 + $0xb8] sm:$0xff]  ;;  %v181_v45 = vld [vmem:[%s2898_s0 + $0xc0] sm:$0xff] }
  0x2a   :  { %1582 = vmatmul.mubr.msk.f32.gmra.mrb[14].mxu0 %vm222_vm0, %v172_v28  ;;  %1624 = vmatmul.mubr.msk.f32.gmra.mrb[10].mxu1 %vm222_vm0, %v200_v30  ;;  %v208_v46 = vld [vmem:[%s2898_s0 + $0x198] sm:$0xff]  ;;  %v209_v47 = vld [vmem:[%s2898_s0 + $0x1a0] sm:$0xff]  ;;  %v182_v48 = vld [vmem:[%s2898_s0 + $0xc8] sm:$0xff] }
  0x2b   :  { %1584 = vmatprep.mubr.msk.f32.mxu0 %vm222_vm0, %v173_v29  ;;  %1626 = vmatprep.mubr.msk.f32.mxu1 %vm222_vm0, %v201_v31  ;;  %v183_v49 = vld [vmem:[%s2898_s0 + $0xd0] sm:$0xff]  ;;  %v210_v50 = vld [vmem:[%s2898_s0 + $0x1a8] sm:$0xff]  ;;  %v184_v52 = vld [vmem:[%s2898_s0 + $0xd8] sm:$0xff] }
  0x2c   :  { %v211_v51 = vld [vmem:[%s2898_s0 + $0x1b0] sm:$0xff]  ;;  %v185_v53 = vld [vmem:[%s2898_s0 + $0xe0] sm:$0xff]  ;;  %v212_v54 = vld [vmem:[%s2898_s0 + $0x1b8] sm:$0xff] }
  0x2d   :  { %v213_v55 = vld [vmem:[%s2898_s0 + $0x1c0] sm:$0xff]  ;;  %v186_v56 = vld [vmem:[%s2898_s0 + $0xe8] sm:$0xff]  ;;  %v187_v57 = vld [vmem:[%s2898_s0 + $0xf0] sm:$0xff] }
  0x2e   :  { %1585 = vmatmul.mubr.msk.f32.gmra.mrb[16].mxu0 %vm222_vm0, %v174_v32  ;;  %1627 = vmatmul.mubr.msk.f32.gmra.mrb[12].mxu1 %vm222_vm0, %v202_v34  ;;  %v214_v58 = vld [vmem:[%s2898_s0 + $0x1c8] sm:$0xff]  ;;  %v215_v59 = vld [vmem:[%s2898_s0 + $0x1d0] sm:$0xff]  ;;  %v188_v60 = vld [vmem:[%s2898_s0 + $0xf8] sm:$0xff] }
  0x2f   :  { %1587 = vmatprep.mubr.msk.f32.mxu0 %vm222_vm0, %v175_v33  ;;  %1629 = vmatprep.mubr.msk.f32.mxu1 %vm222_vm0, %v203_v35  ;;  %v216_v61 = vld [vmem:[%s2898_s0 + $0x1d8] sm:$0xff]  ;;  %v217_v62 = vld [vmem:[%s2898_s0 + $0x1e0] sm:$0xff]  ;;  %v218_v63 = vld [vmem:[%s2898_s0 + $0x1e8] sm:$0xff] }
  0x30   :  { %v219_v0 = vld [vmem:[%s2898_s0 + $0x1f0] sm:$0xff]  ;;  %v220_v1 = vld [vmem:[%s2898_s0 + $0x1f8] sm:$0xff]  ;;  %v94_v2 = vld [vmem:[#allocation2 + $0x8] sm:$0xff] }
  0x31   :  { %v93_v3 = vld [vmem:[#allocation2] sm:$0xff]  ;;  %v96_v9 = vld [vmem:[#allocation2 + $0x18] sm:$0xff]  ;;  %v95_v10 = vld [vmem:[#allocation2 + $0x10] sm:$0xff] }
  0x32   :  { %1588 = vmatmul.mubr.msk.f32.gmra.mrb[18].mxu0 %vm222_vm0, %v176_v36  ;;  %1630 = vmatmul.mubr.msk.f32.gmra.mrb[14].mxu1 %vm222_vm0, %v204_v38  ;;  %v98_v15 = vld [vmem:[#allocation2 + $0x28] sm:$0xff]  ;;  %v97_v4 = vld [vmem:[#allocation2 + $0x20] sm:$0xff]  ;;  %v100_v23 = vld [vmem:[#allocation2 + $0x38] sm:$0xff] }
  0x33   :  { %1590 = vmatprep.mubr.msk.f32.mxu0 %vm222_vm0, %v177_v37  ;;  %1632 = vmatprep.mubr.msk.f32.mxu1 %vm222_vm0, %v205_v39  ;;  %v126_v17 = vld [vmem:[#allocation2 + $0x108] sm:$0xff]  ;;  %v125_v20 = vld [vmem:[#allocation2 + $0x100] sm:$0xff]  ;;  %v99_v27 = vld [vmem:[#allocation2 + $0x30] sm:$0xff] }
  0x34   :  { %v128_v35 = vld [vmem:[#allocation2 + $0x118] sm:$0xff]  ;;  %v127_v38 = vld [vmem:[#allocation2 + $0x110] sm:$0xff] }
  0x36   :  { %1591 = vmatmul.mubr.msk.f32.gmra.mrb[20].mxu0 %vm222_vm0, %v178_v40  ;;  %1633 = vmatmul.mubr.msk.f32.gmra.mrb[16].mxu1 %vm222_vm0, %v206_v42 }
  0x37   :  { %1593 = vmatprep.mubr.msk.f32.mxu0 %vm222_vm0, %v179_v41  ;;  %1635 = vmatprep.mubr.msk.f32.mxu1 %vm222_vm0, %v207_v43  ;;  %v102_v43 = vld [vmem:[#allocation2 + $0x48] sm:$0xff] }
  0x3a   :  { %1594 = vmatmul.mubr.msk.f32.gmra.mrb[22].mxu0 %vm222_vm0, %v180_v44  ;;  %1636 = vmatmul.mubr.msk.f32.gmra.mrb[18].mxu1 %vm222_vm0, %v208_v46 }
  0x3b   :  { %1596 = vmatprep.mubr.msk.f32.mxu0 %vm222_vm0, %v181_v45  ;;  %1638 = vmatprep.mubr.msk.f32.mxu1 %vm222_vm0, %v209_v47 }
  0x3e   :  { %1597 = vmatmul.mubr.msk.f32.gmra.mrb[24].mxu0 %vm222_vm0, %v182_v48  ;;  %1639 = vmatmul.mubr.msk.f32.gmra.mrb[20].mxu1 %vm222_vm0, %v210_v50  ;;  %v101_v48 = vld [vmem:[#allocation2 + $0x40] sm:$0xff] }
  0x3f   :  { %1599 = vmatprep.mubr.msk.f32.mxu0 %vm222_vm0, %v183_v49  ;;  %1641 = vmatprep.mubr.msk.f32.mxu1 %vm222_vm0, %v211_v51 }
  0x42   :  { %1600 = vmatmul.mubr.msk.f32.gmra.mrb[26].mxu0 %vm222_vm0, %v184_v52  ;;  %1642 = vmatmul.mubr.msk.f32.gmra.mrb[22].mxu1 %vm222_vm0, %v212_v54 }
  0x43   :  { %1602 = vmatprep.mubr.msk.f32.mxu0 %vm222_vm0, %v185_v53  ;;  %1644 = vmatprep.mubr.msk.f32.mxu1 %vm222_vm0, %v213_v55 }
  0x46   :  { %1603 = vmatmul.mubr.msk.f32.gmra.mrb[28].mxu0 %vm222_vm0, %v186_v56  ;;  %1645 = vmatmul.mubr.msk.f32.gmra.mrb[24].mxu1 %vm222_vm0, %v214_v58 }
  0x47   :  { %1605 = vmatprep.mubr.msk.f32.mxu0 %vm222_vm0, %v187_v57  ;;  %1647 = vmatprep.mubr.msk.f32.mxu1 %vm222_vm0, %v215_v59  ;;  %v130_v59 = vld [vmem:[#allocation2 + $0x128] sm:$0xff] }
  0x4a   :  { %1606 = vmatmul.mubr.msk.f32.gmra.mrb[30].mxu0 %vm222_vm0, %v188_v60  ;;  %1648 = vmatmul.mubr.msk.f32.gmra.mrb[26].mxu1 %vm222_vm0, %v216_v61  ;;  %v129_v60 = vld [vmem:[#allocation2 + $0x120] sm:$0xff] }
  0x4b   :  { %1650 = vmatprep.mubr.msk.f32.mxu1 %vm222_vm0, %v217_v62 }
  0x4e   :  { %1651 = vmatmul.mubr.msk.f32.gmra.mrb[28].mxu1 %vm222_vm0, %v218_v63 }
  0x4f   :  { %1653 = vmatprep.mubr.msk.f32.mxu1 %vm222_vm0, %v219_v0 }
  0x52   :  { %1654 = vmatmul.mubr.msk.f32.gmra.mrb[30].mxu1 %vm222_vm0, %v220_v1  ;;  %v104_v1 = vld [vmem:[#allocation2 + $0x58] sm:$0xff] }
  0xd7   :  { %v1562_v5 = vpop.f32.mrb[0].mxu0 }
  0xd8   :  { %v801_v6 = vadd.f32 %v1562_v5, %v94_v2  ;;  %v481_v7 = vpop.f32.mrb[1].mxu0 }
  0xd9   :  { %v800_v8 = vadd.f32 %v481_v7, %v93_v3  ;;  %v1610_v24 = vpop.f32.mrb[0].mxu1 }
  0xda   :  { %866 = vst.msk [vmem:[#allocation2 + $0x8] sm:$0xff] %vm28_vm1, %v801_v6  ;;  %v833_v28 = vadd.f32 %v1610_v24, %v126_v17  ;;  %v641_v29 = vpop.f32.mrb[1].mxu1 }
  0xdb   :  { %865 = vst.msk [vmem:[#allocation2] sm:$0xff] %vm28_vm1, %v800_v8  ;;  %v1565_v11 = vpop.f32.mrb[2].mxu0  ;;  %v832_v34 = vadd.f32 %v641_v29, %v125_v20 }
  0xdc   :  { %v803_v12 = vadd.f32 %v1565_v11, %v96_v9  ;;  %v491_v13 = vpop.f32.mrb[3].mxu0  ;;  %898 = vst.msk [vmem:[#allocation2 + $0x108] sm:$0xff] %vm28_vm1, %v833_v28  ;;  %v103_v9 = vld [vmem:[#allocation2 + $0x50] sm:$0xff] }
  0xdd   :  { %v802_v14 = vadd.f32 %v491_v13, %v95_v10  ;;  %897 = vst.msk [vmem:[#allocation2 + $0x100] sm:$0xff] %vm28_vm1, %v832_v34  ;;  %v1613_v44 = vpop.f32.mrb[2].mxu1 }
  0xde   :  { %868 = vst.msk [vmem:[#allocation2 + $0x18] sm:$0xff] %vm28_vm1, %v803_v12  ;;  %v835_v49 = vadd.f32 %v1613_v44, %v128_v35  ;;  %v651_v50 = vpop.f32.mrb[3].mxu1 }
  0xdf   :  { %867 = vst.msk [vmem:[#allocation2 + $0x10] sm:$0xff] %vm28_vm1, %v802_v14  ;;  %v1568_v16 = vpop.f32.mrb[4].mxu0  ;;  %v834_v54 = vadd.f32 %v651_v50, %v127_v38 }
  0xe0   :  { %v805_v18 = vadd.f32 %v1568_v16, %v98_v15  ;;  %v501_v19 = vpop.f32.mrb[5].mxu0  ;;  %900 = vst.msk [vmem:[#allocation2 + $0x118] sm:$0xff] %vm28_vm1, %v835_v49 }
  0xe1   :  { %v933_v21 = vld [vmem:[#allocation2 + $0x8] sm:$0xff]  ;;  %v804_v22 = vadd.f32 %v501_v19, %v97_v4  ;;  %899 = vst.msk [vmem:[#allocation2 + $0x110] sm:$0xff] %vm28_vm1, %v834_v54  ;;  %v1616_v2 = vpop.f32.mrb[4].mxu1 }
  0xe2   :  { %997 = vst.msk [vmem:[%s2900_s2 + $0x8] sm:$0xff] %vm28_vm1, %v933_v21  ;;  %v1199_v25 = vmul.f32 %v933_v21, %v933_v21  ;;  %v932_v26 = vld [vmem:[#allocation2] sm:$0xff]  ;;  %870 = vst.msk [vmem:[#allocation2 + $0x28] sm:$0xff] %vm28_vm1, %v805_v18  ;;  %v1062_v30 = vsel %vm28_vm1, %v933_v21, 0.0  ;;  %v661_v10 = vpop.f32.mrb[5].mxu1  ;;  %v837_v15 = vadd.f32 %v1616_v2, %v130_v59 }
  0xe3   :  { %996 = vst.msk [vmem:[%s2900_s2] sm:$0xff] %vm28_vm1, %v932_v26  ;;  %v1061_v31 = vsel %vm28_vm1, %v932_v26, 0.0  ;;  %v1198_v32 = vmul.f32 %v932_v26, %v932_v26  ;;  %869 = vst.msk [vmem:[#allocation2 + $0x20] sm:$0xff] %vm28_vm1, %v804_v22  ;;  %v1571_v33 = vpop.f32.mrb[6].mxu0  ;;  %v2187_v14 = vld [vmem:[#allocation2 + $0x108] sm:$0xff]  ;;  %v836_v4 = vadd.f32 %v661_v10, %v129_v60 }
  0xe4   :  { %v807_v36 = vadd.f32 %v1571_v33, %v100_v23  ;;  %v511_v37 = vpop.f32.mrb[7].mxu0  ;;  %v1263_v39 = vsel %vm28_vm1, %v1199_v25, 0.0  ;;  %v1063_v45 = vadd.f32 %v1062_v30, %v1061_v31  ;;  %1029 = vst.msk [vmem:[%s2900_s2 + $0x108] sm:$0xff] %vm28_vm1, %v2187_v14  ;;  %v2194_v20 = vld [vmem:[#allocation2 + $0x100] sm:$0xff]  ;;  %v106_v25 = vld [vmem:[#allocation2 + $0x68] sm:$0xff]  ;;  %902 = vst.msk [vmem:[#allocation2 + $0x128] sm:$0xff] %vm28_vm1, %v837_v15 }
  0xe5   :  { %v1262_v40 = vsel %vm28_vm1, %v1198_v32, 0.0  ;;  %v935_v41 = vld [vmem:[#allocation2 + $0x18] sm:$0xff]  ;;  %v806_v42 = vadd.f32 %v511_v37, %v99_v27  ;;  %1028 = vst.msk [vmem:[%s2900_s2 + $0x100] sm:$0xff] %vm28_vm1, %v2194_v20  ;;  %901 = vst.msk [vmem:[#allocation2 + $0x120] sm:$0xff] %vm28_vm1, %v836_v4  ;;  %v105_v30 = vld [vmem:[#allocation2 + $0x60] sm:$0xff] }
  0xe6   :  { %999 = vst.msk [vmem:[%s2900_s2 + $0x18] sm:$0xff] %vm28_vm1, %v935_v41  ;;  %v1201_v46 = vmul.f32 %v935_v41, %v935_v41  ;;  %v934_v47 = vld [vmem:[#allocation2 + $0x10] sm:$0xff]  ;;  %872 = vst.msk [vmem:[#allocation2 + $0x38] sm:$0xff] %vm28_vm1, %v807_v36  ;;  %v1264_v55 = vadd.f32 %v1263_v39, %v1262_v40  ;;  %v1066_v61 = vsel %vm28_vm1, %v935_v41, 0.0 }
  0xe7   :  { %998 = vst.msk [vmem:[%s2900_s2 + $0x10] sm:$0xff] %vm28_vm1, %v934_v47  ;;  %v1064_v51 = vsel %vm28_vm1, %v934_v47, 0.0  ;;  %v1200_v52 = vmul.f32 %v934_v47, %v934_v47  ;;  %871 = vst.msk [vmem:[#allocation2 + $0x30] sm:$0xff] %vm28_vm1, %v806_v42  ;;  %v1574_v53 = vpop.f32.mrb[8].mxu0  ;;  %v2221_v37 = vld [vmem:[#allocation2 + $0x118] sm:$0xff] }
  0xe8   :  { %v1065_v56 = vadd.f32 %v1064_v51, %v1063_v45  ;;  %v809_v57 = vadd.f32 %v1574_v53, %v102_v43  ;;  %v521_v58 = vpop.f32.mrb[9].mxu0  ;;  %v1267_v3 = vsel %vm28_vm1, %v1201_v46, 0.0  ;;  %1031 = vst.msk [vmem:[%s2900_s2 + $0x118] sm:$0xff] %vm28_vm1, %v2221_v37  ;;  %v2228_v42 = vld [vmem:[#allocation2 + $0x110] sm:$0xff]  ;;  %v108_v47 = vld [vmem:[#allocation2 + $0x78] sm:$0xff] }
  0xe9   :  { %v1265_v62 = vsel %vm28_vm1, %v1200_v52, 0.0  ;;  %v937_v63 = vld [vmem:[#allocation2 + $0x28] sm:$0xff]  ;;  %v808_v0 = vadd.f32 %v521_v58, %v101_v48  ;;  %1030 = vst.msk [vmem:[%s2900_s2 + $0x110] sm:$0xff] %vm28_vm1, %v2228_v42  ;;  %v107_v52 = vld [vmem:[#allocation2 + $0x70] sm:$0xff] }
  0xea   :  { %v1266_v5 = vadd.f32 %v1265_v62, %v1264_v55  ;;  %1001 = vst.msk [vmem:[%s2900_s2 + $0x28] sm:$0xff] %vm28_vm1, %v937_v63  ;;  %v1203_v6 = vmul.f32 %v937_v63, %v937_v63  ;;  %v936_v7 = vld [vmem:[#allocation2 + $0x20] sm:$0xff]  ;;  %v1067_v8 = vadd.f32 %v1066_v61, %v1065_v56  ;;  %874 = vst.msk [vmem:[#allocation2 + $0x48] sm:$0xff] %vm28_vm1, %v809_v57  ;;  %v1070_v21 = vsel %vm28_vm1, %v937_v63, 0.0 }
  0xeb   :  { %1000 = vst.msk [vmem:[%s2900_s2 + $0x20] sm:$0xff] %vm28_vm1, %v936_v7  ;;  %v1068_v11 = vsel %vm28_vm1, %v936_v7, 0.0  ;;  %v1202_v12 = vmul.f32 %v936_v7, %v936_v7  ;;  %873 = vst.msk [vmem:[#allocation2 + $0x40] sm:$0xff] %vm28_vm1, %v808_v0  ;;  %v2253_v63 = vld [vmem:[#allocation2 + $0x128] sm:$0xff] }
  0xec   :  { %v1069_v16 = vadd.f32 %v1068_v11, %v1067_v8  ;;  %v1268_v17 = vadd.f32 %v1267_v3, %v1266_v5  ;;  %v1271_v32 = vsel %vm28_vm1, %v1203_v6, 0.0  ;;  %v2255_v0 = vld [vmem:[#allocation2 + $0x120] sm:$0xff]  ;;  %v110_v6 = vld [vmem:[#allocation2 + $0x88] sm:$0xff]  ;;  %1033 = vst.msk [vmem:[%s2900_s2 + $0x128] sm:$0xff] %vm28_vm1, %v2253_v63 }
  0xed   :  { %v1269_v22 = vsel %vm28_vm1, %v1202_v12, 0.0  ;;  %v939_v23 = vld [vmem:[#allocation2 + $0x38] sm:$0xff]  ;;  %1032 = vst.msk [vmem:[%s2900_s2 + $0x120] sm:$0xff] %vm28_vm1, %v2255_v0  ;;  %v109_v11 = vld [vmem:[#allocation2 + $0x80] sm:$0xff] }
  0xee   :  { %v1270_v27 = vadd.f32 %v1269_v22, %v1268_v17  ;;  %1003 = vst.msk [vmem:[%s2900_s2 + $0x38] sm:$0xff] %vm28_vm1, %v939_v23  ;;  %v938_v28 = vld [vmem:[#allocation2 + $0x30] sm:$0xff]  ;;  %v1071_v29 = vadd.f32 %v1070_v21, %v1069_v16  ;;  %v1205_v33 = vmul.f32 %v939_v23, %v939_v23  ;;  %v1074_v43 = vsel %vm28_vm1, %v939_v23, 0.0 }
  0xef   :  { %1002 = vst.msk [vmem:[%s2900_s2 + $0x30] sm:$0xff] %vm28_vm1, %v938_v28  ;;  %v1072_v34 = vsel %vm28_vm1, %v938_v28, 0.0  ;;  %v1204_v35 = vmul.f32 %v938_v28, %v938_v28  ;;  %v112_v28 = vld [vmem:[#allocation2 + $0x98] sm:$0xff] }
  0xf0   :  { %v1073_v38 = vadd.f32 %v1072_v34, %v1071_v29  ;;  %v1272_v39 = vadd.f32 %v1271_v32, %v1270_v27  ;;  %v1275_v54 = vsel %vm28_vm1, %v1205_v33, 0.0  ;;  %v111_v34 = vld [vmem:[#allocation2 + $0x90] sm:$0xff] }
  0xf1   :  { %v1273_v44 = vsel %vm28_vm1, %v1204_v35, 0.0  ;;  %v941_v45 = vld [vmem:[#allocation2 + $0x48] sm:$0xff]  ;;  %v132_v35 = vld [vmem:[#allocation2 + $0x138] sm:$0xff] }
  0xf2   :  { %v1274_v49 = vadd.f32 %v1273_v44, %v1272_v39  ;;  %1005 = vst.msk [vmem:[%s2900_s2 + $0x48] sm:$0xff] %vm28_vm1, %v941_v45  ;;  %v940_v50 = vld [vmem:[#allocation2 + $0x40] sm:$0xff]  ;;  %v1075_v51 = vadd.f32 %v1074_v43, %v1073_v38  ;;  %v1207_v55 = vmul.f32 %v941_v45, %v941_v45 }
  0xf3   :  { %1004 = vst.msk [vmem:[%s2900_s2 + $0x40] sm:$0xff] %vm28_vm1, %v940_v50  ;;  %v1076_v56 = vsel %vm28_vm1, %v940_v50, 0.0  ;;  %v1206_v57 = vmul.f32 %v940_v50, %v940_v50 }
  0xf4   :  { %v1077_v59 = vadd.f32 %v1076_v56, %v1075_v51  ;;  %v1276_v60 = vadd.f32 %v1275_v54, %v1274_v49  ;;  %v131_v49 = vld [vmem:[#allocation2 + $0x130] sm:$0xff]  ;;  %v113_v56 = vld [vmem:[#allocation2 + $0xa0] sm:$0xff] }
  0xf5   :  { %v1577_v13 = vpop.f32.mrb[10].mxu0  ;;  %v2205_v26 = vpop.f32.mrb[6].mxu1  ;;  %v1277_v2 = vsel %vm28_vm1, %v1206_v57, 0.0 }
  0xf6   :  { %v811_v18 = vadd.f32 %v1577_v13, %v104_v1  ;;  %v531_v19 = vpop.f32.mrb[11].mxu0  ;;  %v2212_v31 = vpop.f32.mrb[7].mxu1  ;;  %v1078_v1 = vsel %vm28_vm1, %v941_v45, 0.0  ;;  %v1278_v8 = vadd.f32 %v1277_v2, %v1276_v60  ;;  %v1279_v13 = vsel %vm28_vm1, %v1207_v55, 0.0  ;;  %v114_v55 = vld [vmem:[#allocation2 + $0xa8] sm:$0xff]  ;;  %v133_v2 = vld [vmem:[#allocation2 + $0x140] sm:$0xff] }
  0xf7   :  { %v810_v24 = vadd.f32 %v531_v19, %v103_v9  ;;  %v1079_v10 = vadd.f32 %v1078_v1, %v1077_v59  ;;  %v839_v57 = vadd.f32 %v2205_v26, %v132_v35  ;;  %v134_v1 = vld [vmem:[#allocation2 + $0x148] sm:$0xff]  ;;  %v137_v35 = vld [vmem:[#allocation2 + $0x160] sm:$0xff] }
  0xf8   :  { %876 = vst.msk [vmem:[#allocation2 + $0x58] sm:$0xff] %vm28_vm1, %v811_v18  ;;  %v1280_v19 = vadd.f32 %v1279_v13, %v1278_v8 }
  0xf9   :  { %875 = vst.msk [vmem:[#allocation2 + $0x50] sm:$0xff] %vm28_vm1, %v810_v24  ;;  %v1580_v36 = vpop.f32.mrb[12].mxu0  ;;  %v2237_v48 = vpop.f32.mrb[8].mxu1  ;;  %904 = vst.msk [vmem:[#allocation2 + $0x138] sm:$0xff] %vm28_vm1, %v839_v57 }
  0xfa   :  { %v813_v40 = vadd.f32 %v1580_v36, %v106_v25  ;;  %v541_v41 = vpop.f32.mrb[13].mxu0  ;;  %v2244_v53 = vpop.f32.mrb[9].mxu1 }
  0xfb   :  { %v812_v46 = vadd.f32 %v541_v41, %v105_v30 }
  0xfc   :  { %878 = vst.msk [vmem:[#allocation2 + $0x68] sm:$0xff] %vm28_vm1, %v813_v40 }
  0xfd   :  { %877 = vst.msk [vmem:[#allocation2 + $0x60] sm:$0xff] %vm28_vm1, %v812_v46  ;;  %v1583_v58 = vpop.f32.mrb[14].mxu0  ;;  %v2269_v7 = vpop.f32.mrb[10].mxu1 }
  0xfe   :  { %v815_v61 = vadd.f32 %v1583_v58, %v108_v47  ;;  %v551_v62 = vpop.f32.mrb[15].mxu0  ;;  %v2276_v12 = vpop.f32.mrb[11].mxu1 }
  0xff   :  { %v943_v3 = vld [vmem:[#allocation2 + $0x58] sm:$0xff]  ;;  %v814_v5 = vadd.f32 %v551_v62, %v107_v52 }
 0x100   :  { %1007 = vst.msk [vmem:[%s2900_s2 + $0x58] sm:$0xff] %vm28_vm1, %v943_v3  ;;  %v942_v9 = vld [vmem:[#allocation2 + $0x50] sm:$0xff]  ;;  %880 = vst.msk [vmem:[#allocation2 + $0x78] sm:$0xff] %vm28_vm1, %v815_v61  ;;  %v1209_v15 = vmul.f32 %v943_v3, %v943_v3  ;;  %v1082_v23 = vsel %vm28_vm1, %v943_v3, 0.0 }
 0x101   :  { %1006 = vst.msk [vmem:[%s2900_s2 + $0x50] sm:$0xff] %vm28_vm1, %v942_v9  ;;  %v1080_v4 = vsel %vm28_vm1, %v942_v9, 0.0  ;;  %v1208_v16 = vmul.f32 %v942_v9, %v942_v9  ;;  %879 = vst.msk [vmem:[#allocation2 + $0x70] sm:$0xff] %vm28_vm1, %v814_v5  ;;  %v1586_v17 = vpop.f32.mrb[16].mxu0  ;;  %v2287_v29 = vpop.f32.mrb[12].mxu1  ;;  %v838_v9 = vadd.f32 %v2212_v31, %v131_v49  ;;  %v840_v31 = vadd.f32 %v2244_v53, %v133_v2 }
 0x102   :  { %v1081_v18 = vadd.f32 %v1080_v4, %v1079_v10  ;;  %v817_v21 = vadd.f32 %v1586_v17, %v110_v6  ;;  %v561_v22 = vpop.f32.mrb[17].mxu0  ;;  %v2294_v36 = vpop.f32.mrb[13].mxu1  ;;  %v1283_v38 = vsel %vm28_vm1, %v1209_v15, 0.0  ;;  %v135_v17 = vld [vmem:[#allocation2 + $0x150] sm:$0xff] }
 0x103   :  { %v1281_v24 = vsel %vm28_vm1, %v1208_v16, 0.0  ;;  %v945_v25 = vld [vmem:[#allocation2 + $0x68] sm:$0xff]  ;;  %v816_v27 = vadd.f32 %v561_v22, %v109_v11  ;;  %v136_v16 = vld [vmem:[#allocation2 + $0x158] sm:$0xff]  ;;  %903 = vst.msk [vmem:[#allocation2 + $0x130] sm:$0xff] %vm28_vm1, %v838_v9  ;;  %905 = vst.msk [vmem:[#allocation2 + $0x140] sm:$0xff] %vm28_vm1, %v840_v31 }
 0x104   :  { %v1282_v30 = vadd.f32 %v1281_v24, %v1280_v19  ;;  %1009 = vst.msk [vmem:[%s2900_s2 + $0x68] sm:$0xff] %vm28_vm1, %v945_v25  ;;  %v944_v32 = vld [vmem:[#allocation2 + $0x60] sm:$0xff]  ;;  %v1083_v33 = vadd.f32 %v1082_v23, %v1081_v18  ;;  %882 = vst.msk [vmem:[#allocation2 + $0x88] sm:$0xff] %vm28_vm1, %v817_v21  ;;  %v1211_v39 = vmul.f32 %v945_v25, %v945_v25  ;;  %v1086_v50 = vsel %vm28_vm1, %v945_v25, 0.0  ;;  %v116_v22 = vld [vmem:[#allocation2 + $0xb8] sm:$0xff] }
 0x105   :  { %1008 = vst.msk [vmem:[%s2900_s2 + $0x60] sm:$0xff] %vm28_vm1, %v944_v32  ;;  %v1084_v40 = vsel %vm28_vm1, %v944_v32, 0.0  ;;  %v1210_v41 = vmul.f32 %v944_v32, %v944_v32  ;;  %881 = vst.msk [vmem:[#allocation2 + $0x80] sm:$0xff] %vm28_vm1, %v816_v27  ;;  %v1589_v43 = vpop.f32.mrb[18].mxu0  ;;  %v2306_v58 = vpop.f32.mrb[14].mxu1  ;;  %v115_v23 = vld [vmem:[#allocation2 + $0xb0] sm:$0xff]  ;;  %v841_v24 = vadd.f32 %v2237_v48, %v134_v1 }
 0x106   :  { %v1085_v44 = vadd.f32 %v1084_v40, %v1083_v33  ;;  %v1284_v45 = vadd.f32 %v1283_v38, %v1282_v30  ;;  %v819_v46 = vadd.f32 %v1589_v43, %v112_v28  ;;  %v571_v47 = vpop.f32.mrb[19].mxu0  ;;  %v2313_v3 = vpop.f32.mrb[15].mxu1  ;;  %v1287_v5 = vsel %vm28_vm1, %v1211_v39, 0.0 }
 0x107   :  { %v1285_v51 = vsel %vm28_vm1, %v1210_v41, 0.0  ;;  %v947_v52 = vld [vmem:[#allocation2 + $0x78] sm:$0xff]  ;;  %v818_v54 = vadd.f32 %v571_v47, %v111_v34  ;;  %v138_v34 = vld [vmem:[#allocation2 + $0x168] sm:$0xff]  ;;  %906 = vst.msk [vmem:[#allocation2 + $0x148] sm:$0xff] %vm28_vm1, %v841_v24  ;;  %v843_v40 = vadd.f32 %v2269_v7, %v136_v16  ;;  %v842_v41 = vadd.f32 %v2276_v12, %v135_v17  ;;  %v119_v16 = vld [vmem:[#allocation2 + $0xd0] sm:$0xff] }
 0x108   :  { %v1286_v59 = vadd.f32 %v1285_v51, %v1284_v45  ;;  %1011 = vst.msk [vmem:[%s2900_s2 + $0x78] sm:$0xff] %vm28_vm1, %v947_v52  ;;  %v1213_v60 = vmul.f32 %v947_v52, %v947_v52  ;;  %v946_v61 = vld [vmem:[#allocation2 + $0x70] sm:$0xff]  ;;  %v1087_v62 = vadd.f32 %v1086_v50, %v1085_v44  ;;  %884 = vst.msk [vmem:[#allocation2 + $0x98] sm:$0xff] %vm28_vm1, %v819_v46  ;;  %v1090_v10 = vsel %vm28_vm1, %v947_v52, 0.0  ;;  %v118_v52 = vld [vmem:[#allocation2 + $0xc8] sm:$0xff] }
 0x109   :  { %1010 = vst.msk [vmem:[%s2900_s2 + $0x70] sm:$0xff] %vm28_vm1, %v946_v61  ;;  %v1088_v26 = vsel %vm28_vm1, %v946_v61, 0.0  ;;  %v1212_v6 = vmul.f32 %v946_v61, %v946_v61  ;;  %883 = vst.msk [vmem:[#allocation2 + $0x90] sm:$0xff] %vm28_vm1, %v818_v54  ;;  %v1592_v8 = vpop.f32.mrb[20].mxu0  ;;  %v2329_v25 = vpop.f32.mrb[16].mxu1  ;;  %v845_v54 = vadd.f32 %v2287_v29, %v138_v34  ;;  %v844_v7 = vadd.f32 %v2294_v36, %v137_v35 }
 0x10a   :  { %v1089_v11 = vadd.f32 %v1088_v26, %v1087_v62  ;;  %v1288_v13 = vadd.f32 %v1287_v5, %v1286_v59  ;;  %v821_v15 = vadd.f32 %v1592_v8, %v114_v55  ;;  %v581_v4 = vpop.f32.mrb[21].mxu0  ;;  %v1291_v27 = vsel %vm28_vm1, %v1213_v60, 0.0  ;;  %v2337_v48 = vpop.f32.mrb[17].mxu1  ;;  %908 = vst.msk [vmem:[#allocation2 + $0x158] sm:$0xff] %vm28_vm1, %v843_v40  ;;  %907 = vst.msk [vmem:[#allocation2 + $0x150] sm:$0xff] %vm28_vm1, %v842_v41  ;;  %v117_v59 = vld [vmem:[#allocation2 + $0xc0] sm:$0xff] }
 0x10b   :  { %v1289_v18 = vsel %vm28_vm1, %v1212_v6, 0.0  ;;  %v949_v19 = vld [vmem:[#allocation2 + $0x88] sm:$0xff]  ;;  %v820_v21 = vadd.f32 %v581_v4, %v113_v56  ;;  %v2362_v60 = vld [vmem:[#allocation2 + $0x138] sm:$0xff]  ;;  %910 = vst.msk [vmem:[#allocation2 + $0x168] sm:$0xff] %vm28_vm1, %v845_v54  ;;  %909 = vst.msk [vmem:[#allocation2 + $0x160] sm:$0xff] %vm28_vm1, %v844_v7 }
 0x10c   :  { %v1290_v28 = vadd.f32 %v1289_v18, %v1288_v13  ;;  %1013 = vst.msk [vmem:[%s2900_s2 + $0x88] sm:$0xff] %vm28_vm1, %v949_v19  ;;  %v1215_v30 = vmul.f32 %v949_v19, %v949_v19  ;;  %v948_v32 = vld [vmem:[#allocation2 + $0x80] sm:$0xff]  ;;  %v1091_v33 = vadd.f32 %v1090_v10, %v1089_v11  ;;  %886 = vst.msk [vmem:[#allocation2 + $0xa8] sm:$0xff] %vm28_vm1, %v821_v15  ;;  %v1094_v43 = vsel %vm28_vm1, %v949_v19, 0.0  ;;  %v2380_v9 = vld [vmem:[#allocation2 + $0x130] sm:$0xff] }
 0x10d   :  { %1012 = vst.msk [vmem:[%s2900_s2 + $0x80] sm:$0xff] %vm28_vm1, %v948_v32  ;;  %v1092_v53 = vsel %vm28_vm1, %v948_v32, 0.0  ;;  %v1214_v38 = vmul.f32 %v948_v32, %v948_v32  ;;  %885 = vst.msk [vmem:[#allocation2 + $0xa0] sm:$0xff] %vm28_vm1, %v820_v21  ;;  %v1595_v39 = vpop.f32.mrb[22].mxu0  ;;  %v2355_v12 = vpop.f32.mrb[18].mxu1  ;;  %v120_v4 = vld [vmem:[#allocation2 + $0xd8] sm:$0xff] }
 0x10e   :  { %v1093_v44 = vadd.f32 %v1092_v53, %v1091_v33  ;;  %v1292_v45 = vadd.f32 %v1291_v27, %v1290_v28  ;;  %v823_v46 = vadd.f32 %v1595_v39, %v116_v22  ;;  %v591_v47 = vpop.f32.mrb[23].mxu0  ;;  %v2364_v61 = vpop.f32.mrb[19].mxu1  ;;  %v1295_v29 = vsel %vm28_vm1, %v1215_v30, 0.0  ;;  %1035 = vst.msk [vmem:[%s2900_s2 + $0x138] sm:$0xff] %vm28_vm1, %v2362_v60  ;;  %1034 = vst.msk [vmem:[%s2900_s2 + $0x130] sm:$0xff] %vm28_vm1, %v2380_v9  ;;  %v2396_v22 = vld [vmem:[#allocation2 + $0x148] sm:$0xff] }
 0x10f   :  { %v1293_v49 = vsel %vm28_vm1, %v1214_v38, 0.0  ;;  %v951_v50 = vld [vmem:[#allocation2 + $0x98] sm:$0xff]  ;;  %v822_v51 = vadd.f32 %v591_v47, %v115_v23  ;;  %v2398_v23 = vld [vmem:[#allocation2 + $0x140] sm:$0xff]  ;;  %1037 = vst.msk [vmem:[%s2900_s2 + $0x148] sm:$0xff] %vm28_vm1, %v2396_v22 }
 0x110   :  { %v1294_v55 = vadd.f32 %v1293_v49, %v1292_v45  ;;  %1015 = vst.msk [vmem:[%s2900_s2 + $0x98] sm:$0xff] %vm28_vm1, %v951_v50  ;;  %v950_v56 = vld [vmem:[#allocation2 + $0x90] sm:$0xff]  ;;  %v1095_v57 = vadd.f32 %v1094_v43, %v1093_v44  ;;  %888 = vst.msk [vmem:[#allocation2 + $0xb8] sm:$0xff] %vm28_vm1, %v823_v46  ;;  %v1217_v36 = vmul.f32 %v951_v50, %v951_v50  ;;  %v1098_v10 = vsel %vm28_vm1, %v951_v50, 0.0  ;;  %v122_v45 = vld [vmem:[#allocation2 + $0xe8] sm:$0xff] }
 0x111   :  { %1014 = vst.msk [vmem:[%s2900_s2 + $0x90] sm:$0xff] %vm28_vm1, %v950_v56  ;;  %v1096_v62 = vsel %vm28_vm1, %v950_v56, 0.0  ;;  %v1216_v1 = vmul.f32 %v950_v56, %v950_v56  ;;  %887 = vst.msk [vmem:[#allocation2 + $0xb0] sm:$0xff] %vm28_vm1, %v822_v51  ;;  %v1598_v2 = vpop.f32.mrb[24].mxu0  ;;  %v2389_v17 = vpop.f32.mrb[20].mxu1  ;;  %v2419_v38 = vld [vmem:[#allocation2 + $0x158] sm:$0xff] }
 0x112   :  { %v1097_v5 = vadd.f32 %v1096_v62, %v1095_v57  ;;  %v1296_v26 = vadd.f32 %v1295_v29, %v1294_v55  ;;  %v825_v6 = vadd.f32 %v1598_v2, %v118_v52  ;;  %v601_v8 = vpop.f32.mrb[25].mxu0  ;;  %v2400_v24 = vpop.f32.mrb[21].mxu1  ;;  %v1299_v31 = vsel %vm28_vm1, %v1217_v36, 0.0  ;;  %1036 = vst.msk [vmem:[%s2900_s2 + $0x140] sm:$0xff] %vm28_vm1, %v2398_v23  ;;  %v2421_v39 = vld [vmem:[#allocation2 + $0x150] sm:$0xff]  ;;  %v121_v46 = vld [vmem:[#allocation2 + $0xe0] sm:$0xff] }
 0x113   :  { %v1297_v11 = vsel %vm28_vm1, %v1216_v1, 0.0  ;;  %v953_v13 = vld [vmem:[#allocation2 + $0xa8] sm:$0xff]  ;;  %v824_v15 = vadd.f32 %v601_v8, %v117_v59  ;;  %1039 = vst.msk [vmem:[%s2900_s2 + $0x158] sm:$0xff] %vm28_vm1, %v2419_v38  ;;  %1038 = vst.msk [vmem:[%s2900_s2 + $0x150] sm:$0xff] %vm28_vm1, %v2421_v39  ;;  %v2444_v54 = vld [vmem:[#allocation2 + $0x160] sm:$0xff] }
 0x114   :  { %v1298_v18 = vadd.f32 %v1297_v11, %v1296_v26  ;;  %1017 = vst.msk [vmem:[%s2900_s2 + $0xa8] sm:$0xff] %vm28_vm1, %v953_v13  ;;  %v952_v19 = vld [vmem:[#allocation2 + $0xa0] sm:$0xff]  ;;  %v1099_v21 = vadd.f32 %v1098_v10, %v1097_v5  ;;  %890 = vst.msk [vmem:[#allocation2 + $0xc8] sm:$0xff] %vm28_vm1, %v825_v6  ;;  %v1219_v27 = vmul.f32 %v953_v13, %v953_v13  ;;  %v1102_v40 = vsel %vm28_vm1, %v953_v13, 0.0  ;;  %v2442_v52 = vld [vmem:[#allocation2 + $0x168] sm:$0xff] }
 0x115   :  { %1016 = vst.msk [vmem:[%s2900_s2 + $0xa0] sm:$0xff] %vm28_vm1, %v952_v19  ;;  %v1100_v28 = vsel %vm28_vm1, %v952_v19, 0.0  ;;  %v1218_v30 = vmul.f32 %v952_v19, %v952_v19  ;;  %889 = vst.msk [vmem:[#allocation2 + $0xc0] sm:$0xff] %vm28_vm1, %v824_v15  ;;  %v1601_v32 = vpop.f32.mrb[26].mxu0  ;;  %v2435_v47 = vpop.f32.mrb[22].mxu1  ;;  %v124_v10 = vld [vmem:[#allocation2 + $0xf8] sm:$0xff] }
 0x116   :  { %v1101_v33 = vadd.f32 %v1100_v28, %v1099_v21  ;;  %v1300_v34 = vadd.f32 %v1299_v31, %v1298_v18  ;;  %v827_v35 = vadd.f32 %v1601_v32, %v120_v4  ;;  %v611_v53 = vpop.f32.mrb[27].mxu0  ;;  %v2446_v7 = vpop.f32.mrb[23].mxu1  ;;  %v1303_v55 = vsel %vm28_vm1, %v1219_v27, 0.0  ;;  %1041 = vst.msk [vmem:[%s2900_s2 + $0x168] sm:$0xff] %vm28_vm1, %v2442_v52  ;;  %1040 = vst.msk [vmem:[%s2900_s2 + $0x160] sm:$0xff] %vm28_vm1, %v2444_v54 }
 0x117   :  { %v1301_v41 = vsel %vm28_vm1, %v1218_v30, 0.0  ;;  %v955_v43 = vld [vmem:[#allocation2 + $0xb8] sm:$0xff]  ;;  %v826_v44 = vadd.f32 %v611_v53, %v119_v16  ;;  %v123_v16 = vld [vmem:[#allocation2 + $0xf0] sm:$0xff] }
 0x118   :  { %v1302_v49 = vadd.f32 %v1301_v41, %v1300_v34  ;;  %1019 = vst.msk [vmem:[%s2900_s2 + $0xb8] sm:$0xff] %vm28_vm1, %v955_v43  ;;  %v954_v50 = vld [vmem:[#allocation2 + $0xb0] sm:$0xff]  ;;  %v1103_v51 = vadd.f32 %v1102_v40, %v1101_v33  ;;  %892 = vst.msk [vmem:[#allocation2 + $0xd8] sm:$0xff] %vm28_vm1, %v827_v35  ;;  %v1221_v56 = vmul.f32 %v955_v43, %v955_v43  ;;  %v1106_v5 = vsel %vm28_vm1, %v955_v43, 0.0 }
 0x119   :  { %1018 = vst.msk [vmem:[%s2900_s2 + $0xb0] sm:$0xff] %vm28_vm1, %v954_v50  ;;  %v1104_v57 = vsel %vm28_vm1, %v954_v50, 0.0  ;;  %v1220_v59 = vmul.f32 %v954_v50, %v954_v50  ;;  %891 = vst.msk [vmem:[#allocation2 + $0xd0] sm:$0xff] %vm28_vm1, %v826_v44  ;;  %v1604_v29 = vpop.f32.mrb[28].mxu0  ;;  %v2467_v11 = vpop.f32.mrb[24].mxu1  ;;  %v1230_v43 = vmul.f32 %v2194_v20, %v2194_v20 }
 0x11a   :  { %v1105_v36 = vadd.f32 %v1104_v57, %v1103_v51  ;;  %v1304_v62 = vadd.f32 %v1303_v55, %v1302_v49  ;;  %v829_v1 = vadd.f32 %v1604_v29, %v122_v45  ;;  %v621_v2 = vpop.f32.mrb[29].mxu0  ;;  %v2474_v18 = vpop.f32.mrb[25].mxu1  ;;  %v1307_v19 = vsel %vm28_vm1, %v1221_v56, 0.0 }
 0x11b   :  { %v1305_v26 = vsel %vm28_vm1, %v1220_v59, 0.0  ;;  %v957_v6 = vld [vmem:[#allocation2 + $0xc8] sm:$0xff]  ;;  %v828_v8 = vadd.f32 %v621_v2, %v121_v46 }
 0x11c   :  { %v1306_v13 = vadd.f32 %v1305_v26, %v1304_v62  ;;  %1021 = vst.msk [vmem:[%s2900_s2 + $0xc8] sm:$0xff] %vm28_vm1, %v957_v6  ;;  %v956_v15 = vld [vmem:[#allocation2 + $0xc0] sm:$0xff]  ;;  %v1107_v4 = vadd.f32 %v1106_v5, %v1105_v36  ;;  %894 = vst.msk [vmem:[#allocation2 + $0xe8] sm:$0xff] %vm28_vm1, %v829_v1  ;;  %v1223_v21 = vmul.f32 %v957_v6, %v957_v6  ;;  %v1110_v35 = vsel %vm28_vm1, %v957_v6, 0.0  ;;  %v140_v62 = vld [vmem:[#allocation2 + $0x178] sm:$0xff] }
 0x11d   :  { %1020 = vst.msk [vmem:[%s2900_s2 + $0xc0] sm:$0xff] %vm28_vm1, %v956_v15  ;;  %v1108_v31 = vsel %vm28_vm1, %v956_v15, 0.0  ;;  %v1222_v27 = vmul.f32 %v956_v15, %v956_v15  ;;  %893 = vst.msk [vmem:[#allocation2 + $0xe0] sm:$0xff] %vm28_vm1, %v828_v8  ;;  %v1607_v28 = vpop.f32.mrb[30].mxu0  ;;  %v2487_v44 = vpop.f32.mrb[26].mxu1  ;;  %v2505_v36 = vmul.f32 %v2187_v14, %v2187_v14  ;;  %v139_v1 = vld [vmem:[#allocation2 + $0x170] sm:$0xff] }
 0x11e   :  { %v1109_v30 = vadd.f32 %v1108_v31, %v1107_v4  ;;  %v1308_v32 = vadd.f32 %v1307_v19, %v1306_v13  ;;  %v831_v33 = vadd.f32 %v1607_v28, %v124_v10  ;;  %v631_v34 = vpop.f32.mrb[31].mxu0  ;;  %v2494_v50 = vpop.f32.mrb[27].mxu1  ;;  %v1311_v51 = vsel %vm28_vm1, %v1223_v21, 0.0  ;;  %v141_v21 = vld [vmem:[#allocation2 + $0x180] sm:$0xff] }
 0x11f   :  { %v1309_v53 = vsel %vm28_vm1, %v1222_v27, 0.0  ;;  %v959_v40 = vld [vmem:[#allocation2 + $0xd8] sm:$0xff]  ;;  %v830_v41 = vadd.f32 %v631_v34, %v123_v16  ;;  %v2511_v6 = vsel %vm28_vm1, %v2194_v20, 0.0  ;;  %v2514_v8 = vsel %vm28_vm1, %v1230_v43, 0.0  ;;  %v142_v20 = vld [vmem:[#allocation2 + $0x188] sm:$0xff] }
 0x120   :  { %v1310_v45 = vadd.f32 %v1309_v53, %v1308_v32  ;;  %1023 = vst.msk [vmem:[%s2900_s2 + $0xd8] sm:$0xff] %vm28_vm1, %v959_v40  ;;  %v958_v46 = vld [vmem:[#allocation2 + $0xd0] sm:$0xff]  ;;  %v1111_v49 = vadd.f32 %v1110_v35, %v1109_v30  ;;  %896 = vst.msk [vmem:[#allocation2 + $0xf8] sm:$0xff] %vm28_vm1, %v831_v33  ;;  %v1225_v55 = vmul.f32 %v959_v40, %v959_v40  ;;  %v1114_v2 = vsel %vm28_vm1, %v959_v40, 0.0  ;;  %v144_v40 = vld [vmem:[#allocation2 + $0x198] sm:$0xff] }
 0x121   :  { %1022 = vst.msk [vmem:[%s2900_s2 + $0xd0] sm:$0xff] %vm28_vm1, %v958_v46  ;;  %v1112_v56 = vsel %vm28_vm1, %v958_v46, 0.0  ;;  %v1224_v57 = vmul.f32 %v958_v46, %v958_v46  ;;  %895 = vst.msk [vmem:[#allocation2 + $0xf0] sm:$0xff] %vm28_vm1, %v830_v41  ;;  %v2516_v10 = vpop.f32.mrb[28].mxu1  ;;  %v2524_v19 = vmul.f32 %v2228_v42, %v2228_v42  ;;  %v847_v53 = vadd.f32 %v2306_v58, %v140_v62  ;;  %v143_v41 = vld [vmem:[#allocation2 + $0x190] sm:$0xff] }
 0x122   :  { %v1113_v59 = vadd.f32 %v1112_v56, %v1111_v49  ;;  %v1312_v29 = vadd.f32 %v1311_v51, %v1310_v45  ;;  %v2526_v31 = vpop.f32.mrb[29].mxu1  ;;  %v1315_v27 = vsel %vm28_vm1, %v1225_v55, 0.0  ;;  %v846_v46 = vadd.f32 %v2313_v3, %v139_v1  ;;  %v146_v55 = vld [vmem:[#allocation2 + $0x1a8] sm:$0xff]  ;;  %v145_v56 = vld [vmem:[#allocation2 + $0x1a0] sm:$0xff]  ;;  %v148_v3 = vld [vmem:[#allocation2 + $0x1b8] sm:$0xff] }
 0x123   :  { %v1313_v5 = vsel %vm28_vm1, %v1224_v57, 0.0  ;;  %v961_v26 = vld [vmem:[#allocation2 + $0xe8] sm:$0xff]  ;;  %v849_v49 = vadd.f32 %v2329_v25, %v142_v20  ;;  %v848_v51 = vadd.f32 %v2337_v48, %v141_v21  ;;  %912 = vst.msk [vmem:[#allocation2 + $0x178] sm:$0xff] %vm28_vm1, %v847_v53  ;;  %v147_v25 = vld [vmem:[#allocation2 + $0x1b0] sm:$0xff] }
 0x124   :  { %v1314_v13 = vadd.f32 %v1313_v5, %v1312_v29  ;;  %1025 = vst.msk [vmem:[%s2900_s2 + $0xe8] sm:$0xff] %vm28_vm1, %v961_v26  ;;  %v1227_v15 = vmul.f32 %v961_v26, %v961_v26  ;;  %v960_v4 = vld [vmem:[#allocation2 + $0xe0] sm:$0xff]  ;;  %v1115_v16 = vadd.f32 %v1114_v2, %v1113_v59  ;;  %v1118_v28 = vsel %vm28_vm1, %v961_v26, 0.0  ;;  %911 = vst.msk [vmem:[#allocation2 + $0x170] sm:$0xff] %vm28_vm1, %v846_v46 }
 0x125   :  { %1024 = vst.msk [vmem:[%s2900_s2 + $0xe0] sm:$0xff] %vm28_vm1, %v960_v4  ;;  %v1116_v30 = vsel %vm28_vm1, %v960_v4, 0.0  ;;  %v1226_v32 = vmul.f32 %v960_v4, %v960_v4  ;;  %v1655_v57 = vpop.f32.mrb[30].mxu1  ;;  %914 = vst.msk [vmem:[#allocation2 + $0x188] sm:$0xff] %vm28_vm1, %v849_v49  ;;  %v851_v26 = vadd.f32 %v2355_v12, %v144_v40  ;;  %v149_v4 = vld [vmem:[#allocation2 + $0x1c0] sm:$0xff]  ;;  %v852_v12 = vadd.f32 %v2400_v24, %v145_v56  ;;  %v156_v40 = vld [vmem:[#allocation2 + $0x1f8] sm:$0xff] }
 0x126   :  { %v1319_v33 = vsel %vm28_vm1, %v1227_v15, 0.0  ;;  %v1117_v34 = vadd.f32 %v1116_v30, %v1115_v16  ;;  %v1316_v35 = vadd.f32 %v1315_v27, %v1314_v13  ;;  %v791_v1 = vpop.f32.mrb[31].mxu1  ;;  %913 = vst.msk [vmem:[#allocation2 + $0x180] sm:$0xff] %vm28_vm1, %v848_v51  ;;  %v850_v13 = vadd.f32 %v2364_v61, %v143_v41  ;;  %v150_v15 = vld [vmem:[#allocation2 + $0x1c8] sm:$0xff]  ;;  %v152_v16 = vld [vmem:[#allocation2 + $0x1d8] sm:$0xff]  ;;  %v151_v30 = vld [vmem:[#allocation2 + $0x1d0] sm:$0xff] }
 0x127   :  { %v1317_v43 = vsel %vm28_vm1, %v1226_v32, 0.0  ;;  %v963_v45 = vld [vmem:[#allocation2 + $0xf8] sm:$0xff]  ;;  %v154_v32 = vld [vmem:[#allocation2 + $0x1e8] sm:$0xff]  ;;  %916 = vst.msk [vmem:[#allocation2 + $0x198] sm:$0xff] %vm28_vm1, %v851_v26  ;;  %v855_v61 = vadd.f32 %v2435_v47, %v148_v3  ;;  %v854_v53 = vadd.f32 %v2446_v7, %v147_v25  ;;  %v155_v41 = vld [vmem:[#allocation2 + $0x1f0] sm:$0xff]  ;;  %v859_v24 = vadd.f32 %v2487_v44, %v152_v16 }
 0x128   :  { %v1318_v59 = vadd.f32 %v1317_v43, %v1316_v35  ;;  %1027 = vst.msk [vmem:[%s2900_s2 + $0xf8] sm:$0xff] %vm28_vm1, %v963_v45  ;;  %v1122_v58 = vsel %vm28_vm1, %v963_v45, 0.0  ;;  %v1229_v29 = vmul.f32 %v963_v45, %v963_v45  ;;  %v962_v62 = vld [vmem:[#allocation2 + $0xf0] sm:$0xff]  ;;  %v1119_v2 = vadd.f32 %v1118_v28, %v1117_v34  ;;  %v153_v34 = vld [vmem:[#allocation2 + $0x1e0] sm:$0xff]  ;;  %915 = vst.msk [vmem:[#allocation2 + $0x190] sm:$0xff] %vm28_vm1, %v850_v13 }
 0x129   :  { %1026 = vst.msk [vmem:[%s2900_s2 + $0xf0] sm:$0xff] %vm28_vm1, %v962_v62  ;;  %v1120_v48 = vsel %vm28_vm1, %v962_v62, 0.0  ;;  %v1228_v5 = vmul.f32 %v962_v62, %v962_v62  ;;  %v853_v28 = vadd.f32 %v2389_v17, %v146_v55  ;;  %v857_v17 = vadd.f32 %v2467_v11, %v150_v15  ;;  %917 = vst.msk [vmem:[#allocation2 + $0x1a0] sm:$0xff] %vm28_vm1, %v852_v12 }
 0x12a   :  { %v1323_v20 = vsel %vm28_vm1, %v1229_v29, 0.0  ;;  %v1121_v21 = vadd.f32 %v1120_v48, %v1119_v2  ;;  %v1320_v27 = vadd.f32 %v1319_v33, %v1318_v59  ;;  %v856_v45 = vadd.f32 %v2474_v18, %v149_v4  ;;  %920 = vst.msk [vmem:[#allocation2 + $0x1b8] sm:$0xff] %vm28_vm1, %v855_v61  ;;  %919 = vst.msk [vmem:[#allocation2 + $0x1b0] sm:$0xff] %vm28_vm1, %v854_v53 }
 0x12b   :  { %v1321_v35 = vsel %vm28_vm1, %v1228_v5, 0.0  ;;  %918 = vst.msk [vmem:[#allocation2 + $0x1a8] sm:$0xff] %vm28_vm1, %v853_v28  ;;  %v858_v47 = vadd.f32 %v2494_v50, %v151_v30  ;;  %v861_v7 = vadd.f32 %v2516_v10, %v154_v32  ;;  %v860_v46 = vadd.f32 %v2526_v31, %v153_v34  ;;  %922 = vst.msk [vmem:[#allocation2 + $0x1c8] sm:$0xff] %vm28_vm1, %v857_v17  ;;  %v2582_v50 = vld [vmem:[#allocation2 + $0x178] sm:$0xff] }
 0x12c   :  { %v1322_v33 = vadd.f32 %v1321_v35, %v1320_v27  ;;  %v1123_v43 = vadd.f32 %v1122_v58, %v1121_v21  ;;  %921 = vst.msk [vmem:[#allocation2 + $0x1c0] sm:$0xff] %vm28_vm1, %v856_v45  ;;  %v863_v11 = vadd.f32 %v1655_v57, %v156_v40  ;;  %v862_v18 = vadd.f32 %v791_v1, %v155_v41 }
 0x12d   :  { %v1126_v55 = vsel %vm28_vm1, %v2187_v14, 0.0  ;;  %v1128_v44 = vsel %vm28_vm1, %v2228_v42, 0.0  ;;  %924 = vst.msk [vmem:[#allocation2 + $0x1d8] sm:$0xff] %vm28_vm1, %v859_v24  ;;  %923 = vst.msk [vmem:[#allocation2 + $0x1d0] sm:$0xff] %vm28_vm1, %v858_v47  ;;  %v2594_v14 = vld [vmem:[#allocation2 + $0x170] sm:$0xff]  ;;  %v2596_v42 = vld [vmem:[#allocation2 + $0x188] sm:$0xff]  ;;  %v1233_v56 = vmul.f32 %v2221_v37, %v2221_v37  ;;  %v1234_v59 = vmul.f32 %v2255_v0, %v2255_v0 }
 0x12e   :  { %v1125_v49 = vadd.f32 %v2511_v6, %v1123_v43  ;;  %v1324_v51 = vadd.f32 %v1323_v20, %v1322_v33  ;;  %926 = vst.msk [vmem:[#allocation2 + $0x1e8] sm:$0xff] %vm28_vm1, %v861_v7  ;;  %925 = vst.msk [vmem:[#allocation2 + $0x1e0] sm:$0xff] %vm28_vm1, %v860_v46  ;;  %v2598_v31 = vld [vmem:[#allocation2 + $0x180] sm:$0xff]  ;;  %v1329_v57 = vsel %vm28_vm1, %v2524_v19, 0.0  ;;  %v2625_v58 = vld [vmem:[#allocation2 + $0x198] sm:$0xff]  ;;  %v1130_v62 = vsel %vm28_vm1, %v2221_v37, 0.0 }
 0x12f   :  { %1043 = vst.msk [vmem:[%s2900_s2 + $0x178] sm:$0xff] %vm28_vm1, %v2582_v50  ;;  %928 = vst.msk [vmem:[#allocation2 + $0x1f8] sm:$0xff] %vm28_vm1, %v863_v11  ;;  %v2627_v29 = vld [vmem:[#allocation2 + $0x190] sm:$0xff]  ;;  %v1132_v2 = vsel %vm28_vm1, %v2255_v0, 0.0  ;;  %v1331_v5 = vsel %vm28_vm1, %v1233_v56, 0.0  ;;  %v1235_v26 = vmul.f32 %v2253_v63, %v2253_v63  ;;  %v1333_v13 = vsel %vm28_vm1, %v1234_v59, 0.0 }
 0x130   :  { %v1326_v6 = vadd.f32 %v2514_v8, %v1324_v51  ;;  %v1127_v10 = vadd.f32 %v1126_v55, %v1125_v49  ;;  %927 = vst.msk [vmem:[#allocation2 + $0x1f0] sm:$0xff] %vm28_vm1, %v862_v18  ;;  %v1327_v8 = vsel %vm28_vm1, %v2505_v36, 0.0  ;;  %1042 = vst.msk [vmem:[%s2900_s2 + $0x170] sm:$0xff] %vm28_vm1, %v2594_v14  ;;  %v2645_v37 = vld [vmem:[#allocation2 + $0x1a0] sm:$0xff]  ;;  %v1236_v15 = vmul.f32 %v2380_v9, %v2380_v9 }
 0x131   :  { %1045 = vst.msk [vmem:[%s2900_s2 + $0x188] sm:$0xff] %vm28_vm1, %v2596_v42  ;;  %1044 = vst.msk [vmem:[%s2900_s2 + $0x180] sm:$0xff] %vm28_vm1, %v2598_v31  ;;  %v2647_v48 = vld [vmem:[#allocation2 + $0x1b0] sm:$0xff]  ;;  %v2649_v0 = vld [vmem:[#allocation2 + $0x1b8] sm:$0xff]  ;;  %v1134_v32 = vsel %vm28_vm1, %v2253_v63, 0.0  ;;  %v1136_v34 = vsel %vm28_vm1, %v2380_v9, 0.0  ;;  %v1237_v40 = vmul.f32 %v2362_v60, %v2362_v60  ;;  %v1238_v33 = vmul.f32 %v2398_v23, %v2398_v23 }
 0x132   :  { %v1129_v36 = vadd.f32 %v1128_v44, %v1127_v10  ;;  %v1328_v19 = vadd.f32 %v1327_v8, %v1326_v6  ;;  %1047 = vst.msk [vmem:[%s2900_s2 + $0x198] sm:$0xff] %vm28_vm1, %v2625_v58  ;;  %1046 = vst.msk [vmem:[%s2900_s2 + $0x190] sm:$0xff] %vm28_vm1, %v2627_v29  ;;  %v2643_v3 = vld [vmem:[#allocation2 + $0x1a8] sm:$0xff]  ;;  %v1335_v53 = vsel %vm28_vm1, %v1235_v26, 0.0  ;;  %v1337_v41 = vsel %vm28_vm1, %v1236_v15, 0.0 }
 0x133   :  { %1049 = vst.msk [vmem:[%s2900_s2 + $0x1a8] sm:$0xff] %vm28_vm1, %v2643_v3  ;;  %1048 = vst.msk [vmem:[%s2900_s2 + $0x1a0] sm:$0xff] %vm28_vm1, %v2645_v37  ;;  %v2667_v4 = vld [vmem:[#allocation2 + $0x1c0] sm:$0xff]  ;;  %v2669_v16 = vld [vmem:[#allocation2 + $0x1c8] sm:$0xff]  ;;  %v1138_v45 = vsel %vm28_vm1, %v2362_v60, 0.0  ;;  %v1140_v24 = vsel %vm28_vm1, %v2398_v23, 0.0  ;;  %v1239_v49 = vmul.f32 %v2396_v22, %v2396_v22  ;;  %v1240_v11 = vmul.f32 %v2421_v39, %v2421_v39 }
 0x134   :  { %v1330_v25 = vadd.f32 %v1329_v57, %v1328_v19  ;;  %v1131_v1 = vadd.f32 %v1130_v62, %v1129_v36  ;;  %1050 = vst.msk [vmem:[%s2900_s2 + $0x1b0] sm:$0xff] %vm28_vm1, %v2647_v48  ;;  %1051 = vst.msk [vmem:[%s2900_s2 + $0x1b8] sm:$0xff] %vm28_vm1, %v2649_v0  ;;  %v2681_v27 = vld [vmem:[#allocation2 + $0x1d0] sm:$0xff]  ;;  %v2683_v28 = vld [vmem:[#allocation2 + $0x1d8] sm:$0xff]  ;;  %v1339_v46 = vsel %vm28_vm1, %v1237_v40, 0.0  ;;  %v1341_v51 = vsel %vm28_vm1, %v1238_v33, 0.0 }
 0x135   :  { %v2685_v30 = vld [vmem:[#allocation2 + $0x1e0] sm:$0xff]  ;;  %1052 = vst.msk [vmem:[%s2900_s2 + $0x1c0] sm:$0xff] %vm28_vm1, %v2667_v4  ;;  %1053 = vst.msk [vmem:[%s2900_s2 + $0x1c8] sm:$0xff] %vm28_vm1, %v2669_v16  ;;  %v2701_v35 = vld [vmem:[#allocation2 + $0x1e8] sm:$0xff]  ;;  %v1142_v60 = vsel %vm28_vm1, %v2396_v22, 0.0  ;;  %v1144_v23 = vsel %vm28_vm1, %v2421_v39, 0.0  ;;  %v1241_v8 = vmul.f32 %v2419_v38, %v2419_v38  ;;  %v1242_v57 = vmul.f32 %v2444_v54, %v2444_v54 }
 0x136   :  { %v1133_v20 = vadd.f32 %v1132_v2, %v1131_v1  ;;  %v1332_v21 = vadd.f32 %v1331_v5, %v1330_v25  ;;  %v2705_v61 = vld [vmem:[#allocation2 + $0x1f8] sm:$0xff]  ;;  %1054 = vst.msk [vmem:[%s2900_s2 + $0x1d0] sm:$0xff] %vm28_vm1, %v2681_v27  ;;  %1055 = vst.msk [vmem:[%s2900_s2 + $0x1d8] sm:$0xff] %vm28_vm1, %v2683_v28  ;;  %v1343_v10 = vsel %vm28_vm1, %v1239_v49, 0.0  ;;  %v1345_v56 = vsel %vm28_vm1, %v1240_v11, 0.0 }
 0x137   :  { %v2703_v12 = vld [vmem:[#allocation2 + $0x1f0] sm:$0xff]  ;;  %1056 = vst.msk [vmem:[%s2900_s2 + $0x1e0] sm:$0xff] %vm28_vm1, %v2685_v30  ;;  %1057 = vst.msk [vmem:[%s2900_s2 + $0x1e8] sm:$0xff] %vm28_vm1, %v2701_v35  ;;  %v1146_v22 = vsel %vm28_vm1, %v2419_v38, 0.0  ;;  %v1148_v39 = vsel %vm28_vm1, %v2444_v54, 0.0  ;;  %v1347_v2 = vsel %vm28_vm1, %v1241_v8, 0.0  ;;  %v1243_v25 = vmul.f32 %v2442_v52, %v2442_v52 }
 0x138   :  { %v1334_v63 = vadd.f32 %v1333_v13, %v1332_v21  ;;  %v1135_v9 = vadd.f32 %v1134_v32, %v1133_v20  ;;  %1058 = vst.msk [vmem:[%s2900_s2 + $0x1f0] sm:$0xff] %vm28_vm1, %v2703_v12  ;;  %1059 = vst.msk [vmem:[%s2900_s2 + $0x1f8] sm:$0xff] %vm28_vm1, %v2705_v61  ;;  %v1349_v1 = vsel %vm28_vm1, %v1242_v57, 0.0  ;;  %v1244_v5 = vmul.f32 %v2594_v14, %v2594_v14  ;;  %s1710_s2 = smov [#allocation3]  }
 0x139   :  { %v1150_v38 = vsel %vm28_vm1, %v2442_v52, 0.0  ;;  %v1152_v54 = vsel %vm28_vm1, %v2594_v14, 0.0  ;;  %v1351_v21 = vsel %vm28_vm1, %v1243_v25, 0.0  ;;  %v1245_v32 = vmul.f32 %v2582_v50, %v2582_v50  ;;  %s1405_s24 = sshll.u32 %s1710_s2, 4  ;;  %s1406_s24 = int_to_ptr.vmem [resolvable:$true] %s1405_s24 }
 0x13a   :  { %v1137_v43 = vadd.f32 %v1136_v34, %v1135_v9  ;;  %v1336_v17 = vadd.f32 %v1335_v53, %v1334_v63  ;;  %v1353_v34 = vsel %vm28_vm1, %v1244_v5, 0.0  ;;  %v1246_v63 = vmul.f32 %v2598_v31, %v2598_v31  ;;  %s1661_s27 = scalar_lea.vmem %s1406_s24, 16  ;;  %s1665_s28 = scalar_lea.vmem %s1406_s24, 32 }
 0x13b   :  { %v1154_v52 = vsel %vm28_vm1, %v2582_v50, 0.0  ;;  %v1156_v14 = vsel %vm28_vm1, %v2598_v31, 0.0  ;;  %v1355_v33 = vsel %vm28_vm1, %v1245_v32, 0.0  ;;  %v1158_v50 = vsel %vm28_vm1, %v2596_v42, 0.0  ;;  %p1662_p0 = scmp.ne.s32.totalorder %s1406_s24, %s1661_s27  ;;  %p1666_p1 = scmp.lt.s32.totalorder %s1406_s24, %s1406_s24 }
 0x13c   :  { %v1338_v47 = vadd.f32 %v1337_v41, %v1336_v17  ;;  %v1139_v7 = vadd.f32 %v1138_v45, %v1137_v43  ;;  %v1247_v43 = vmul.f32 %v2596_v42, %v2596_v42  ;;  %v1357_v17 = vsel %vm28_vm1, %v1246_v63, 0.0  ;;  %p1667_p2 = scmp.lt.s32.totalorder %s1665_s28, %s1661_s27 }
 0x13d   :  { %v1248_v45 = vmul.f32 %v2627_v29, %v2627_v29  ;;  %v1160_v31 = vsel %vm28_vm1, %v2627_v29, 0.0  ;;  %v1250_v11 = vmul.f32 %v2645_v37, %v2645_v37  ;;  %v1162_v42 = vsel %vm28_vm1, %v2625_v58, 0.0 }
 0x13e   :  { %v1141_v18 = vadd.f32 %v1140_v24, %v1139_v7  ;;  %v1340_v55 = vadd.f32 %v1339_v46, %v1338_v47  ;;  %v1359_v49 = vsel %vm28_vm1, %v1247_v43, 0.0  ;;  %v1164_v29 = vsel %vm28_vm1, %v2645_v37, 0.0  ;;  %p1668_p3 = por %p1667_p2, %p1666_p1 }
 0x13f   :  { %v1168_v37 = vsel %vm28_vm1, %v2647_v48, 0.0  ;;  %v1257_v63 = vmul.f32 %v2683_v28, %v2683_v28  ;;  %v1259_v43 = vmul.f32 %v2701_v35, %v2701_v35 }
 0x140   :  { %v1342_v44 = vadd.f32 %v1341_v51, %v1340_v55  ;;  %v1143_v6 = vadd.f32 %v1142_v60, %v1141_v18  ;;  %v1249_v51 = vmul.f32 %v2625_v58, %v2625_v58  ;;  %v1361_v18 = vsel %vm28_vm1, %v1248_v45, 0.0  ;;  %p1669_p4 = pnand %p1668_p3, %p1662_p0 }
 0x141   :  { %v1166_v58 = vsel %vm28_vm1, %v2643_v3, 0.0  ;;  %v1379_v45 = vsel %vm28_vm1, %v1257_v63, 0.0 }
 0x142   :  { %v1145_v59 = vadd.f32 %v1144_v23, %v1143_v6  ;;  %v1344_v36 = vadd.f32 %v1343_v10, %v1342_v44  ;;  %v1251_v6 = vmul.f32 %v2643_v3, %v2643_v3  ;;  %v1252_v10 = vmul.f32 %v2647_v48, %v2647_v48 }
 0x143   :  { %v1363_v8 = vsel %vm28_vm1, %v1249_v51, 0.0  ;;  %v1170_v3 = vsel %vm28_vm1, %v2649_v0, 0.0  ;;  %v1172_v48 = vsel %vm28_vm1, %v2667_v4, 0.0 }
 0x144   :  { %v1346_v19 = vadd.f32 %v1345_v56, %v1344_v36  ;;  %v1147_v62 = vadd.f32 %v1146_v22, %v1145_v59  ;;  %v1365_v56 = vsel %vm28_vm1, %v1250_v11, 0.0 }
 0x146   :  { %v1149_v26 = vadd.f32 %v1148_v39, %v1147_v62  ;;  %v1348_v13 = vadd.f32 %v1347_v2, %v1346_v19  ;;  %v1253_v39 = vmul.f32 %v2649_v0, %v2649_v0  ;;  %v1254_v19 = vmul.f32 %v2667_v4, %v2667_v4 }
 0x147   :  { %v1367_v62 = vsel %vm28_vm1, %v1251_v6, 0.0  ;;  %v1369_v2 = vsel %vm28_vm1, %v1252_v10, 0.0  ;;  %v1174_v0 = vsel %vm28_vm1, %v2669_v16, 0.0  ;;  %v1176_v4 = vsel %vm28_vm1, %v2681_v27, 0.0 }
 0x148   :  { %v1350_v15 = vadd.f32 %v1349_v1, %v1348_v13  ;;  %v1151_v20 = vadd.f32 %v1150_v38, %v1149_v26  ;;  %v1255_v13 = vmul.f32 %v2669_v16, %v2669_v16  ;;  %v1256_v38 = vmul.f32 %v2681_v27, %v2681_v27 }
 0x149   :  { %v1178_v16 = vsel %vm28_vm1, %v2683_v28, 0.0  ;;  %v1180_v27 = vsel %vm28_vm1, %v2685_v30, 0.0  ;;  %v1182_v28 = vsel %vm28_vm1, %v2701_v35, 0.0 }
 0x14a   :  { %v1153_v9 = vadd.f32 %v1152_v54, %v1151_v20  ;;  %v1352_v53 = vadd.f32 %v1351_v21, %v1350_v15  ;;  %v1371_v54 = vsel %vm28_vm1, %v1253_v39, 0.0  ;;  %v1373_v15 = vsel %vm28_vm1, %v1254_v19, 0.0 }
 0x14c   :  { %v1354_v40 = vadd.f32 %v1353_v34, %v1352_v53  ;;  %v1155_v41 = vadd.f32 %v1154_v52, %v1153_v9  ;;  %v1258_v9 = vmul.f32 %v2685_v30, %v2685_v30  ;;  %v1375_v53 = vsel %vm28_vm1, %v1255_v13, 0.0 }
 0x14d   :  { %v1377_v52 = vsel %vm28_vm1, %v1256_v38, 0.0  ;;  %v1184_v30 = vsel %vm28_vm1, %v2703_v12, 0.0 }
 0x14e   :  { %v1157_v24 = vadd.f32 %v1156_v14, %v1155_v41  ;;  %v1356_v47 = vadd.f32 %v1355_v33, %v1354_v40 }
 0x150   :  { %v1358_v7 = vadd.f32 %v1357_v17, %v1356_v47  ;;  %v1159_v46 = vadd.f32 %v1158_v50, %v1157_v24  ;;  %v1260_v17 = vmul.f32 %v2703_v12, %v2703_v12  ;;  %v1381_v24 = vsel %vm28_vm1, %v1258_v9, 0.0 }
 0x152   :  { %v1161_v55 = vadd.f32 %v1160_v31, %v1159_v46  ;;  %v1360_v60 = vadd.f32 %v1359_v49, %v1358_v7  ;;  %v1261_v46 = vmul.f32 %v2705_v61, %v2705_v61  ;;  %v1383_v49 = vsel %vm28_vm1, %v1259_v43, 0.0 }
 0x153   :  { %v1385_v51 = vsel %vm28_vm1, %v1260_v17, 0.0 }
 0x154   :  { %v1163_v23 = vadd.f32 %v1162_v42, %v1161_v55  ;;  %v1362_v44 = vadd.f32 %v1361_v18, %v1360_v60  ;;  %v1186_v55 = vsel %vm28_vm1, %v2705_v61, 0.0  ;;  %v1387_v35 = vsel %vm28_vm1, %v1261_v46, 0.0  ;;  %v1197_v61 = vld [vmem:[#allocation5] sm:$0x1] }
 0x156   :  { %v1165_v57 = vadd.f32 %v1164_v29, %v1163_v23  ;;  %v1364_v59 = vadd.f32 %v1363_v8, %v1362_v44 }
 0x158   :  { %v1167_v36 = vadd.f32 %v1166_v58, %v1165_v57  ;;  %v1366_v22 = vadd.f32 %v1365_v56, %v1364_v59  ;;  %v1060_v58 = vld [vmem:[#allocation3] sm:$0x1] }
 0x15a   :  { %v1169_v25 = vadd.f32 %v1168_v37, %v1167_v36  ;;  %v1368_v1 = vadd.f32 %v1367_v62, %v1366_v22 }
 0x15c   :  { %v1171_v5 = vadd.f32 %v1170_v3, %v1169_v25  ;;  %v1370_v26 = vadd.f32 %v1369_v2, %v1368_v1 }
 0x15e   :  { %v1173_v20 = vadd.f32 %v1172_v48, %v1171_v5  ;;  %v1372_v21 = vadd.f32 %v1371_v54, %v1370_v26 }
 0x160   :  { %v1175_v32 = vadd.f32 %v1174_v0, %v1173_v20  ;;  %v1374_v34 = vadd.f32 %v1373_v15, %v1372_v21 }
 0x162   :  { %v1177_v14 = vadd.f32 %v1176_v4, %v1175_v32  ;;  %v1376_v40 = vadd.f32 %v1375_v53, %v1374_v34 }
 0x164   :  { %v1179_v41 = vadd.f32 %v1178_v16, %v1177_v14  ;;  %v1378_v33 = vadd.f32 %v1377_v52, %v1376_v40 }
 0x166   :  { %v1181_v47 = vadd.f32 %v1180_v27, %v1179_v41  ;;  %v1380_v50 = vadd.f32 %v1379_v45, %v1378_v33 }
 0x168   :  { %v1183_v31 = vadd.f32 %v1182_v28, %v1181_v47  ;;  %v1382_v7 = vadd.f32 %v1381_v24, %v1380_v50 }
 0x16a   :  { %v1185_v11 = vadd.f32 %v1184_v30, %v1183_v31  ;;  %v1384_v18 = vadd.f32 %v1383_v49, %v1382_v7 }
 0x16c   :  { %v1187_v60 = vadd.f32 %v1186_v55, %v1185_v11  ;;  %v1386_v42 = vadd.f32 %v1385_v51, %v1384_v18 }
 0x16e   :  { %v1188_v29 = vrot.slane %v1187_v60, 4  ;;  %v1388_v12 = vadd.f32 %v1387_v35, %v1386_v42 }
 0x170   :  { %v1189_v23 = vadd.f32 %v1188_v29, %v1187_v60  ;;  %v1389_v44 = vrot.slane %v1388_v12, 4 }
 0x172   :  { %v1190_v6 = vrot.slane %v1189_v23, 2  ;;  %v1390_v10 = vadd.f32 %v1389_v44, %v1388_v12 }
 0x174   :  { %v1191_v8 = vadd.f32 %v1190_v6, %v1189_v23  ;;  %v1391_v56 = vrot.slane %v1390_v10, 2 }
 0x176   :  { %v1192_v57 = vrot.slane %v1191_v8, 1  ;;  %v1392_v59 = vadd.f32 %v1391_v56, %v1390_v10 }
 0x178   :  { %v1193_v37 = vadd.f32 %v1192_v57, %v1191_v8  ;;  %v1393_v36 = vrot.slane %v1392_v59, 1 }
 0x17a   :  { %v1194_v22 = vadd.f32 %v1193_v37, %v1060_v58  ;;  %v1394_v39 = vadd.f32 %v1393_v36, %v1392_v59 }
 0x17c   :  { %1196 = vst.msk [vmem:[#allocation3] sm:$0x1] %vm22_vm2, %v1194_v22  ;;  %v1395_v19 = vadd.f32 %v1394_v39, %v1197_v61 }
 0x17d   :  { %1672 = shalt.err (!%p1669_p4)
}
 0x17e   :  { %s1673_s5 = scalar_lea.hbm %s2901_s3, 16 }
 0x17f   :  { %p1674_p5 = scmp.ne.s32.totalorder %s2901_s3, %s1673_s5  ;;  %p1677_p6 = scmp.lt.u32.totalorder %s1673_s5, %s2901_s3 }
 0x181   :  { %p1679_p7 = pnand %p1677_p6, %p1674_p5 }
 0x183   :  { %1682 = shalt.err (!%p1679_p7)
}
 0x184   :  { %1408 = dma.vmem_to_hbm [thread:$0]  %s1406_s24, 16, %s2901_s3, [#allocation4]   ;;  %1396 = vst.msk [vmem:[#allocation5] sm:$0x1] %vm22_vm2, %v1395_v19 }
 0x185   :  { %s1683_s11 = scalar_lea.vmem %s2865_s26, 16  ;;  %s1687_s12 = scalar_lea.vmem %s2865_s26, 32 }
 0x186   :  { %p1684_p8 = scmp.ne.s32.totalorder %s2865_s26, %s1683_s11  ;;  %p1688_p9 = scmp.lt.s32.totalorder %s2865_s26, %s2865_s26 }
 0x187   :  { %p1689_p10 = scmp.lt.s32.totalorder %s1687_s12, %s1683_s11 }
 0x189   :  { %p1690_p11 = por %p1689_p10, %p1688_p9 }
 0x18b   :  { %p1691_p12 = pnand %p1690_p11, %p1684_p8 }
 0x18d   :  { %1694 = shalt.err (!%p1691_p12)
}
 0x18e   :  { %s1695_s15 = scalar_lea.hbm %s2902_s4, 16 }
 0x18f   :  { %p1696_p13 = scmp.ne.s32.totalorder %s2902_s4, %s1695_s15  ;;  %p1699_p0 = scmp.lt.u32.totalorder %s1695_s15, %s2902_s4 }
 0x191   :  { %p1701_p1 = pnand %p1699_p0, %p1696_p13 }
 0x193   :  { %1704 = shalt.err (!%p1701_p1)
}
 0x194   :  { %1418 = dma.vmem_to_hbm [thread:$0]  %s2865_s26, 16, %s2902_s4, [#allocation6]  }
 0x195   :  { %1705 = dma.done.wait [#allocation4], 16  }
 0x196   :  { %1706 = vsyncadd [#allocation4], 4294967280 }
 0x197   :  { %1707 = dma.done.wait [#allocation6], 16  }
 0x198   :  { %1708 = vsyncadd [#allocation6], 4294967280 }
 0x199   :  { %1427 = vsyncpa [#allocation4], 1 }
 0x19a   :  { %1428 = vsyncpa [#allocation6], 1 }

</bundles_post_ra>
